<compile_context>
chip_gen: v7x
topology: tpu7x:2x2x1
jax: 0.10.0
libtpu: 0.0.40
codegen_flags: <defaults>
</compile_context>

<pallas_src>
import jax
import jax.numpy as jnp
from jax.experimental import pallas as pl
from jax.experimental.pallas import tpu as pltpu


def _build_fused_kernel(level_dims):
    """Build the fused kernel. level_dims: tuple of (C, Hs, Ws, Hk, Wk).

    Kernel refs (in order): x_0, k_0, x_1, k_1, ..., then out_0, out_1, ...
      x_i:   (C_i, Hs_i*Ws_i)   search features, lane = flattened spatial
      k_i:   (C_i, Hk_i*Wk_i)   template features
      out_i: (C_i, Hs_i*Ws_i)   Ws-strided correlation map (valid window is
                                sliced out by the wrapper)
    Grid is (B, n_levels); the (squeezed) batch block index comes from axis 0
    and the level to compute from axis 1.
    """
    n = len(level_dims)

    def kernel(*refs):
        in_refs = refs[: 2 * n]
        out_refs = refs[2 * n:]
        level = pl.program_id(1)

        def make_level_body(i, c, hs, ws, hk, wk):
            x_ref = in_refs[2 * i]
            k_ref = in_refs[2 * i + 1]
            o_ref = out_refs[i]
            s = hs * ws

            def body():
                x = x_ref[...].astype(jnp.float32)   # (C, Hs*Ws)
                k = k_ref[...].astype(jnp.float32)   # (C, Hk*Wk)
                # Tap (0, 0): no shift needed.
                acc = x * k[:, 0:1]
                # Remaining taps: lane-roll of the flat map by d = p*Ws + q so
                # that acc[:, m] accumulates x[:, m + d] * k[:, p*Wk + q].
                # (roll(x, s - d) == roll(x, -d): element m+d moves to slot m.)
                for p in range(hk):
                    for q in range(wk):
                        if p == 0 and q == 0:
                            continue
                        d = p * ws + q
                        shifted = pltpu.roll(x, shift=s - d, axis=1)
                        acc = acc + shifted * k[:, p * wk + q: p * wk + q + 1]
                o_ref[...] = acc.astype(o_ref.dtype)

            return body

        for i, dims in enumerate(level_dims):
            pl.when(level == i)(make_level_body(i, *dims))

    return kernel


def dw_corr_fused(pairs):
    """Fused Pallas version of siamfc.conv2d_dw_group over several levels.

    pairs: sequence of (x, kernel) with x (B, C, Hs, Ws) and kernel (B, C, Hk, Wk)
           in NCHW (PyTorch) layout.
    Returns a tuple of NCHW outputs (B, C, Ho, Wo), one per pair, each matching
    F.conv2d(x.view(1, B*C, Hs, Ws), kernel.view(B*C, 1, Hk, Wk), groups=B*C).
    """
    pairs = tuple(pairs)
    n = len(pairs)
    B = pairs[0][0].shape[0]

    flat_in, in_specs, out_specs, out_shapes = [], [], [], []
    level_dims, meta = [], []
    flops = 0
    bytes_accessed = 0
    for (x, k) in pairs:
        b, c, hs, ws = x.shape
        kb, kc, hk, wk = k.shape
        assert b == B and kb == B and kc == c
        s, t = hs * ws, hk * wk
        # Metadata-only reshapes of contiguous NCHW (no transpose, no copy).
        flat_in.append(jnp.reshape(x, (B, c, s)))
        flat_in.append(jnp.reshape(k, (B, c, t)))
        in_specs.append(pl.BlockSpec((None, c, s), lambda bb, ll: (bb, 0, 0)))
        in_specs.append(pl.BlockSpec((None, c, t), lambda bb, ll: (bb, 0, 0)))
        out_specs.append(pl.BlockSpec((None, c, s), lambda bb, ll: (bb, 0, 0)))
        out_shapes.append(jax.ShapeDtypeStruct((B, c, s), x.dtype))
        level_dims.append((c, hs, ws, hk, wk))
        meta.append((c, hs, ws, hk, wk))
        itemsize = jnp.dtype(x.dtype).itemsize
        flops += 2 * B * c * s * t
        bytes_accessed += (2 * B * c * s + B * c * t) * itemsize

    kernel = _build_fused_kernel(tuple(level_dims))

    # Single launch; grid = (batch, level).  Every operand is a whole-array
    # (per-batch) block resident in VMEM.  Batch axis "parallel" lets v7x's two
    # TensorCores split the work; the level axis "arbitrary" bounds live
    # ranges per level (one pl.when branch per grid step).
    outs = pl.pallas_call(
        kernel,
        grid=(B, n),
        in_specs=in_specs,
        out_specs=tuple(out_specs),
        out_shape=tuple(out_shapes),
        compiler_params=pltpu.CompilerParams(
            dimension_semantics=("parallel", "arbitrary")),
        cost_estimate=pl.CostEstimate(
            flops=flops, transcendentals=0, bytes_accessed=bytes_accessed),
    )(*flat_in)
    if not isinstance(outs, (list, tuple)):
        outs = (outs,)

    results = []
    for o, (c, hs, ws, hk, wk) in zip(outs, meta):
        ho, wo = hs - hk + 1, ws - wk + 1
        o4 = jnp.reshape(o, (B, c, hs, ws))        # metadata-only
        results.append(o4[:, :, :ho, :wo])         # one small slice per level
    return tuple(results)


@jax.jit
def conv2d_dw_group(x, kernel):
    """Single-level API, kept for parity with the PyTorch helper."""
    return dw_corr_fused(((x, kernel),))[0]


@jax.jit
def _match_pallas(s_b1, o_b1, s_b2, o_b2, s_b3, o_b3, s_b4, o_b4):
    # One fused pallas_call computes all four pyramid-level correlations.
    return dw_corr_fused(((s_b1, o_b1), (s_b2, o_b2), (s_b3, o_b3), (s_b4, o_b4)))


class SiameseMaskPallas:
    """Pallas implementation of SiameseMask's matching compute.

    The Siamese depthwise cross-correlation between the object template pyramid
    (obj_b1..obj_b4) and the search pyramid (s_b1..s_b4) runs as ONE fused
    Pallas TPU kernel covering all levels and the whole batch.
    """
    # TODO(synk): `basenet`, `get_final_ch`, `double_conv` (b4b3_b2 / b3b2_b1 /
    # b2b1_b0) and `map_conv` are external, undefined modules in the reference
    # source, so the post-correlation decoder (concat + bilinear F.interpolate
    # + double_conv stacks) is not reproduced here; match() returns the four
    # per-level correlation maps.

    def match(self, obj, search):
        obj_b1, obj_b2, obj_b3, obj_b4 = obj
        s_b1, s_b2, s_b3, s_b4 = search
        b1, b2, b3, b4 = _match_pallas(s_b1, obj_b1, s_b2, obj_b2,
                                       s_b3, obj_b3, s_b4, obj_b4)
        return b1, b2, b3, b4


def _ref_conv2d_dw_group(x, kernel):
    """Pure-JAX reference identical to the PyTorch conv2d_dw_group."""
    B, C, Hs, Ws = x.shape
    _, _, Hk, Wk = kernel.shape
    xr = x.reshape(1, B * C, Hs, Ws)
    kr = kernel.reshape(B * C, 1, Hk, Wk)
    out = jax.lax.conv_general_dilated(
        xr, kr, window_strides=(1, 1), padding="VALID",
        dimension_numbers=("NCHW", "OIHW", "NCHW"),
        feature_group_count=B * C)
    return out.reshape(B, C, out.shape[2], out.shape[3])


if __name__ == "__main__":
    key = jax.random.PRNGKey(0)
    B = 2
    # (channels, search_spatial, obj_spatial) per pyramid level b1..b4
    level_cfg = [(4, 16, 6), (8, 12, 4), (16, 8, 3), (32, 6, 3)]

    search, obj = [], []
    for (c, ss, so) in level_cfg:
        key, ks, ko = jax.random.split(key, 3)
        search.append(jax.random.normal(ks, (B, c, ss, ss), jnp.float32))
        obj.append(jax.random.normal(ko, (B, c, so, so), jnp.float32))

    model = SiameseMaskPallas()
    outs = model.match(tuple(obj), tuple(search))
    outs = jax.block_until_ready(outs)

    # Verify against the pure-JAX reference of F.conv2d(..., groups=B*C).
    refs = [_ref_conv2d_dw_group(s, o) for s, o in zip(search, obj)]
    for got, ref in zip(outs, refs):
        assert got.shape == ref.shape, (got.shape, ref.shape)
        assert jnp.allclose(got, ref, atol=1e-4, rtol=1e-4), \
            float(jnp.max(jnp.abs(got - ref)))

    # Also exercise the single-level API on the smallest level.
    single = jax.block_until_ready(conv2d_dw_group(search[3], obj[3]))
    assert jnp.allclose(single, refs[3], atol=1e-4, rtol=1e-4)

    print("KERNEL_OK")
</pallas_src>

<mosaic_0001>
module attributes {stable_mosaic.version = 11 : i64} {
  func.func @kernel(%arg0: i32, %arg1: i32, %arg2: memref<1x4x256xf32, #tpu.memory_space<vmem>>, %arg3: memref<1x4x36xf32, #tpu.memory_space<vmem>>, %arg4: memref<1x8x144xf32, #tpu.memory_space<vmem>>, %arg5: memref<1x8x16xf32, #tpu.memory_space<vmem>>, %arg6: memref<1x16x64xf32, #tpu.memory_space<vmem>>, %arg7: memref<1x16x9xf32, #tpu.memory_space<vmem>>, %arg8: memref<1x32x36xf32, #tpu.memory_space<vmem>>, %arg9: memref<1x32x9xf32, #tpu.memory_space<vmem>>, %arg10: memref<1x4x256xf32, #tpu.memory_space<vmem>>, %arg11: memref<1x8x144xf32, #tpu.memory_space<vmem>>, %arg12: memref<1x16x64xf32, #tpu.memory_space<vmem>>, %arg13: memref<1x32x36xf32, #tpu.memory_space<vmem>>) attributes {dimension_semantics = [#tpu.dimension_semantics<parallel>, #tpu.dimension_semantics<arbitrary>], iteration_bounds = array<i64: 2, 4>, scalar_prefetch = 0 : i64, scratch_operands = 0 : i64, tpu.core_type = #tpu.core_type<tc>, window_params = [{transform_indices = @transform_0, window_bounds = array<i64: 1, 4, 256>}, {transform_indices = @transform_1, window_bounds = array<i64: 1, 4, 36>}, {transform_indices = @transform_2, window_bounds = array<i64: 1, 8, 144>}, {transform_indices = @transform_3, window_bounds = array<i64: 1, 8, 16>}, {transform_indices = @transform_4, window_bounds = array<i64: 1, 16, 64>}, {transform_indices = @transform_5, window_bounds = array<i64: 1, 16, 9>}, {transform_indices = @transform_6, window_bounds = array<i64: 1, 32, 36>}, {transform_indices = @transform_7, window_bounds = array<i64: 1, 32, 9>}, {transform_indices = @transform_8, window_bounds = array<i64: 1, 4, 256>}, {transform_indices = @transform_9, window_bounds = array<i64: 1, 8, 144>}, {transform_indices = @transform_10, window_bounds = array<i64: 1, 16, 64>}, {transform_indices = @transform_11, window_bounds = array<i64: 1, 32, 36>}]} {
    %c0_i32 = arith.constant 0 : i32
    %0 = arith.cmpi eq, %arg1, %c0_i32 : i32
    %1 = arith.extui %0 : i1 to i32
    %c0_i32_0 = arith.constant 0 : i32
    %2 = arith.cmpi ne, %1, %c0_i32_0 : i32
    scf.if %2 {
      %c0 = arith.constant 0 : index
      %c0_4 = arith.constant 0 : index
      %c0_5 = arith.constant 0 : index
      %12 = vector.load %arg2[%c0, %c0_4, %c0_5] : memref<1x4x256xf32, #tpu.memory_space<vmem>>, vector<1x4x256xf32>
      %13 = vector.shape_cast %12 : vector<1x4x256xf32> to vector<4x256xf32>
      %c0_6 = arith.constant 0 : index
      %c0_7 = arith.constant 0 : index
      %c0_8 = arith.constant 0 : index
      %14 = vector.load %arg3[%c0_6, %c0_7, %c0_8] : memref<1x4x36xf32, #tpu.memory_space<vmem>>, vector<1x4x36xf32>
      %15 = vector.shape_cast %14 : vector<1x4x36xf32> to vector<4x36xf32>
      %16 = vector.extract_strided_slice %15 {offsets = [0, 0], sizes = [4, 1], strides = [1, 1]} : vector<4x36xf32> to vector<4x1xf32>
      %17 = vector.broadcast %16 : vector<4x1xf32> to vector<4x256xf32>
      %18 = arith.mulf %13, %17 : vector<4x256xf32>
      %c255_i32 = arith.constant 255 : i32
      %19 = tpu.dynamic_rotate %13 by %c255_i32 dim 1 : vector<4x256xf32>, i32 -> vector<4x256xf32>
      %20 = vector.extract_strided_slice %15 {offsets = [0, 1], sizes = [4, 1], strides = [1, 1]} : vector<4x36xf32> to vector<4x1xf32>
      %21 = vector.broadcast %20 : vector<4x1xf32> to vector<4x256xf32>
      %22 = arith.mulf %19, %21 : vector<4x256xf32>
      %23 = arith.addf %18, %22 : vector<4x256xf32>
      %c254_i32 = arith.constant 254 : i32
      %24 = tpu.dynamic_rotate %13 by %c254_i32 dim 1 : vector<4x256xf32>, i32 -> vector<4x256xf32>
      %25 = vector.extract_strided_slice %15 {offsets = [0, 2], sizes = [4, 1], strides = [1, 1]} : vector<4x36xf32> to vector<4x1xf32>
      %26 = vector.broadcast %25 : vector<4x1xf32> to vector<4x256xf32>
      %27 = arith.mulf %24, %26 : vector<4x256xf32>
      %28 = arith.addf %23, %27 : vector<4x256xf32>
      %c253_i32 = arith.constant 253 : i32
      %29 = tpu.dynamic_rotate %13 by %c253_i32 dim 1 : vector<4x256xf32>, i32 -> vector<4x256xf32>
      %30 = vector.extract_strided_slice %15 {offsets = [0, 3], sizes = [4, 1], strides = [1, 1]} : vector<4x36xf32> to vector<4x1xf32>
      %31 = vector.broadcast %30 : vector<4x1xf32> to vector<4x256xf32>
      %32 = arith.mulf %29, %31 : vector<4x256xf32>
      %33 = arith.addf %28, %32 : vector<4x256xf32>
      %c252_i32 = arith.constant 252 : i32
      %34 = tpu.dynamic_rotate %13 by %c252_i32 dim 1 : vector<4x256xf32>, i32 -> vector<4x256xf32>
      %35 = vector.extract_strided_slice %15 {offsets = [0, 4], sizes = [4, 1], strides = [1, 1]} : vector<4x36xf32> to vector<4x1xf32>
      %36 = vector.broadcast %35 : vector<4x1xf32> to vector<4x256xf32>
      %37 = arith.mulf %34, %36 : vector<4x256xf32>
      %38 = arith.addf %33, %37 : vector<4x256xf32>
      %c251_i32 = arith.constant 251 : i32
      %39 = tpu.dynamic_rotate %13 by %c251_i32 dim 1 : vector<4x256xf32>, i32 -> vector<4x256xf32>
      %40 = vector.extract_strided_slice %15 {offsets = [0, 5], sizes = [4, 1], strides = [1, 1]} : vector<4x36xf32> to vector<4x1xf32>
      %41 = vector.broadcast %40 : vector<4x1xf32> to vector<4x256xf32>
      %42 = arith.mulf %39, %41 : vector<4x256xf32>
      %43 = arith.addf %38, %42 : vector<4x256xf32>
      %c240_i32 = arith.constant 240 : i32
      %44 = tpu.dynamic_rotate %13 by %c240_i32 dim 1 : vector<4x256xf32>, i32 -> vector<4x256xf32>
      %45 = vector.extract_strided_slice %15 {offsets = [0, 6], sizes = [4, 1], strides = [1, 1]} : vector<4x36xf32> to vector<4x1xf32>
      %46 = vector.broadcast %45 : vector<4x1xf32> to vector<4x256xf32>
      %47 = arith.mulf %44, %46 : vector<4x256xf32>
      %48 = arith.addf %43, %47 : vector<4x256xf32>
      %c239_i32 = arith.constant 239 : i32
      %49 = tpu.dynamic_rotate %13 by %c239_i32 dim 1 : vector<4x256xf32>, i32 -> vector<4x256xf32>
      %50 = vector.extract_strided_slice %15 {offsets = [0, 7], sizes = [4, 1], strides = [1, 1]} : vector<4x36xf32> to vector<4x1xf32>
      %51 = vector.broadcast %50 : vector<4x1xf32> to vector<4x256xf32>
      %52 = arith.mulf %49, %51 : vector<4x256xf32>
      %53 = arith.addf %48, %52 : vector<4x256xf32>
      %c238_i32 = arith.constant 238 : i32
      %54 = tpu.dynamic_rotate %13 by %c238_i32 dim 1 : vector<4x256xf32>, i32 -> vector<4x256xf32>
      %55 = vector.extract_strided_slice %15 {offsets = [0, 8], sizes = [4, 1], strides = [1, 1]} : vector<4x36xf32> to vector<4x1xf32>
      %56 = vector.broadcast %55 : vector<4x1xf32> to vector<4x256xf32>
      %57 = arith.mulf %54, %56 : vector<4x256xf32>
      %58 = arith.addf %53, %57 : vector<4x256xf32>
      %c237_i32 = arith.constant 237 : i32
      %59 = tpu.dynamic_rotate %13 by %c237_i32 dim 1 : vector<4x256xf32>, i32 -> vector<4x256xf32>
      %60 = vector.extract_strided_slice %15 {offsets = [0, 9], sizes = [4, 1], strides = [1, 1]} : vector<4x36xf32> to vector<4x1xf32>
      %61 = vector.broadcast %60 : vector<4x1xf32> to vector<4x256xf32>
      %62 = arith.mulf %59, %61 : vector<4x256xf32>
      %63 = arith.addf %58, %62 : vector<4x256xf32>
      %c236_i32 = arith.constant 236 : i32
      %64 = tpu.dynamic_rotate %13 by %c236_i32 dim 1 : vector<4x256xf32>, i32 -> vector<4x256xf32>
      %65 = vector.extract_strided_slice %15 {offsets = [0, 10], sizes = [4, 1], strides = [1, 1]} : vector<4x36xf32> to vector<4x1xf32>
      %66 = vector.broadcast %65 : vector<4x1xf32> to vector<4x256xf32>
      %67 = arith.mulf %64, %66 : vector<4x256xf32>
      %68 = arith.addf %63, %67 : vector<4x256xf32>
      %c235_i32 = arith.constant 235 : i32
      %69 = tpu.dynamic_rotate %13 by %c235_i32 dim 1 : vector<4x256xf32>, i32 -> vector<4x256xf32>
      %70 = vector.extract_strided_slice %15 {offsets = [0, 11], sizes = [4, 1], strides = [1, 1]} : vector<4x36xf32> to vector<4x1xf32>
      %71 = vector.broadcast %70 : vector<4x1xf32> to vector<4x256xf32>
      %72 = arith.mulf %69, %71 : vector<4x256xf32>
      %73 = arith.addf %68, %72 : vector<4x256xf32>
      %c224_i32 = arith.constant 224 : i32
      %74 = tpu.dynamic_rotate %13 by %c224_i32 dim 1 : vector<4x256xf32>, i32 -> vector<4x256xf32>
      %75 = vector.extract_strided_slice %15 {offsets = [0, 12], sizes = [4, 1], strides = [1, 1]} : vector<4x36xf32> to vector<4x1xf32>
      %76 = vector.broadcast %75 : vector<4x1xf32> to vector<4x256xf32>
      %77 = arith.mulf %74, %76 : vector<4x256xf32>
      %78 = arith.addf %73, %77 : vector<4x256xf32>
      %c223_i32 = arith.constant 223 : i32
      %79 = tpu.dynamic_rotate %13 by %c223_i32 dim 1 : vector<4x256xf32>, i32 -> vector<4x256xf32>
      %80 = vector.extract_strided_slice %15 {offsets = [0, 13], sizes = [4, 1], strides = [1, 1]} : vector<4x36xf32> to vector<4x1xf32>
      %81 = vector.broadcast %80 : vector<4x1xf32> to vector<4x256xf32>
      %82 = arith.mulf %79, %81 : vector<4x256xf32>
      %83 = arith.addf %78, %82 : vector<4x256xf32>
      %c222_i32 = arith.constant 222 : i32
      %84 = tpu.dynamic_rotate %13 by %c222_i32 dim 1 : vector<4x256xf32>, i32 -> vector<4x256xf32>
      %85 = vector.extract_strided_slice %15 {offsets = [0, 14], sizes = [4, 1], strides = [1, 1]} : vector<4x36xf32> to vector<4x1xf32>
      %86 = vector.broadcast %85 : vector<4x1xf32> to vector<4x256xf32>
      %87 = arith.mulf %84, %86 : vector<4x256xf32>
      %88 = arith.addf %83, %87 : vector<4x256xf32>
      %c221_i32 = arith.constant 221 : i32
      %89 = tpu.dynamic_rotate %13 by %c221_i32 dim 1 : vector<4x256xf32>, i32 -> vector<4x256xf32>
      %90 = vector.extract_strided_slice %15 {offsets = [0, 15], sizes = [4, 1], strides = [1, 1]} : vector<4x36xf32> to vector<4x1xf32>
      %91 = vector.broadcast %90 : vector<4x1xf32> to vector<4x256xf32>
      %92 = arith.mulf %89, %91 : vector<4x256xf32>
      %93 = arith.addf %88, %92 : vector<4x256xf32>
      %c220_i32 = arith.constant 220 : i32
      %94 = tpu.dynamic_rotate %13 by %c220_i32 dim 1 : vector<4x256xf32>, i32 -> vector<4x256xf32>
      %95 = vector.extract_strided_slice %15 {offsets = [0, 16], sizes = [4, 1], strides = [1, 1]} : vector<4x36xf32> to vector<4x1xf32>
      %96 = vector.broadcast %95 : vector<4x1xf32> to vector<4x256xf32>
      %97 = arith.mulf %94, %96 : vector<4x256xf32>
      %98 = arith.addf %93, %97 : vector<4x256xf32>
      %c219_i32 = arith.constant 219 : i32
      %99 = tpu.dynamic_rotate %13 by %c219_i32 dim 1 : vector<4x256xf32>, i32 -> vector<4x256xf32>
      %100 = vector.extract_strided_slice %15 {offsets = [0, 17], sizes = [4, 1], strides = [1, 1]} : vector<4x36xf32> to vector<4x1xf32>
      %101 = vector.broadcast %100 : vector<4x1xf32> to vector<4x256xf32>
      %102 = arith.mulf %99, %101 : vector<4x256xf32>
      %103 = arith.addf %98, %102 : vector<4x256xf32>
      %c208_i32 = arith.constant 208 : i32
      %104 = tpu.dynamic_rotate %13 by %c208_i32 dim 1 : vector<4x256xf32>, i32 -> vector<4x256xf32>
      %105 = vector.extract_strided_slice %15 {offsets = [0, 18], sizes = [4, 1], strides = [1, 1]} : vector<4x36xf32> to vector<4x1xf32>
      %106 = vector.broadcast %105 : vector<4x1xf32> to vector<4x256xf32>
      %107 = arith.mulf %104, %106 : vector<4x256xf32>
      %108 = arith.addf %103, %107 : vector<4x256xf32>
      %c207_i32 = arith.constant 207 : i32
      %109 = tpu.dynamic_rotate %13 by %c207_i32 dim 1 : vector<4x256xf32>, i32 -> vector<4x256xf32>
      %110 = vector.extract_strided_slice %15 {offsets = [0, 19], sizes = [4, 1], strides = [1, 1]} : vector<4x36xf32> to vector<4x1xf32>
      %111 = vector.broadcast %110 : vector<4x1xf32> to vector<4x256xf32>
      %112 = arith.mulf %109, %111 : vector<4x256xf32>
      %113 = arith.addf %108, %112 : vector<4x256xf32>
      %c206_i32 = arith.constant 206 : i32
      %114 = tpu.dynamic_rotate %13 by %c206_i32 dim 1 : vector<4x256xf32>, i32 -> vector<4x256xf32>
      %115 = vector.extract_strided_slice %15 {offsets = [0, 20], sizes = [4, 1], strides = [1, 1]} : vector<4x36xf32> to vector<4x1xf32>
      %116 = vector.broadcast %115 : vector<4x1xf32> to vector<4x256xf32>
      %117 = arith.mulf %114, %116 : vector<4x256xf32>
      %118 = arith.addf %113, %117 : vector<4x256xf32>
      %c205_i32 = arith.constant 205 : i32
      %119 = tpu.dynamic_rotate %13 by %c205_i32 dim 1 : vector<4x256xf32>, i32 -> vector<4x256xf32>
      %120 = vector.extract_strided_slice %15 {offsets = [0, 21], sizes = [4, 1], strides = [1, 1]} : vector<4x36xf32> to vector<4x1xf32>
      %121 = vector.broadcast %120 : vector<4x1xf32> to vector<4x256xf32>
      %122 = arith.mulf %119, %121 : vector<4x256xf32>
      %123 = arith.addf %118, %122 : vector<4x256xf32>
      %c204_i32 = arith.constant 204 : i32
      %124 = tpu.dynamic_rotate %13 by %c204_i32 dim 1 : vector<4x256xf32>, i32 -> vector<4x256xf32>
      %125 = vector.extract_strided_slice %15 {offsets = [0, 22], sizes = [4, 1], strides = [1, 1]} : vector<4x36xf32> to vector<4x1xf32>
      %126 = vector.broadcast %125 : vector<4x1xf32> to vector<4x256xf32>
      %127 = arith.mulf %124, %126 : vector<4x256xf32>
      %128 = arith.addf %123, %127 : vector<4x256xf32>
      %c203_i32 = arith.constant 203 : i32
      %129 = tpu.dynamic_rotate %13 by %c203_i32 dim 1 : vector<4x256xf32>, i32 -> vector<4x256xf32>
      %130 = vector.extract_strided_slice %15 {offsets = [0, 23], sizes = [4, 1], strides = [1, 1]} : vector<4x36xf32> to vector<4x1xf32>
      %131 = vector.broadcast %130 : vector<4x1xf32> to vector<4x256xf32>
      %132 = arith.mulf %129, %131 : vector<4x256xf32>
      %133 = arith.addf %128, %132 : vector<4x256xf32>
      %c192_i32 = arith.constant 192 : i32
      %134 = tpu.dynamic_rotate %13 by %c192_i32 dim 1 : vector<4x256xf32>, i32 -> vector<4x256xf32>
      %135 = vector.extract_strided_slice %15 {offsets = [0, 24], sizes = [4, 1], strides = [1, 1]} : vector<4x36xf32> to vector<4x1xf32>
      %136 = vector.broadcast %135 : vector<4x1xf32> to vector<4x256xf32>
      %137 = arith.mulf %134, %136 : vector<4x256xf32>
      %138 = arith.addf %133, %137 : vector<4x256xf32>
      %c191_i32 = arith.constant 191 : i32
      %139 = tpu.dynamic_rotate %13 by %c191_i32 dim 1 : vector<4x256xf32>, i32 -> vector<4x256xf32>
      %140 = vector.extract_strided_slice %15 {offsets = [0, 25], sizes = [4, 1], strides = [1, 1]} : vector<4x36xf32> to vector<4x1xf32>
      %141 = vector.broadcast %140 : vector<4x1xf32> to vector<4x256xf32>
      %142 = arith.mulf %139, %141 : vector<4x256xf32>
      %143 = arith.addf %138, %142 : vector<4x256xf32>
      %c190_i32 = arith.constant 190 : i32
      %144 = tpu.dynamic_rotate %13 by %c190_i32 dim 1 : vector<4x256xf32>, i32 -> vector<4x256xf32>
      %145 = vector.extract_strided_slice %15 {offsets = [0, 26], sizes = [4, 1], strides = [1, 1]} : vector<4x36xf32> to vector<4x1xf32>
      %146 = vector.broadcast %145 : vector<4x1xf32> to vector<4x256xf32>
      %147 = arith.mulf %144, %146 : vector<4x256xf32>
      %148 = arith.addf %143, %147 : vector<4x256xf32>
      %c189_i32 = arith.constant 189 : i32
      %149 = tpu.dynamic_rotate %13 by %c189_i32 dim 1 : vector<4x256xf32>, i32 -> vector<4x256xf32>
      %150 = vector.extract_strided_slice %15 {offsets = [0, 27], sizes = [4, 1], strides = [1, 1]} : vector<4x36xf32> to vector<4x1xf32>
      %151 = vector.broadcast %150 : vector<4x1xf32> to vector<4x256xf32>
      %152 = arith.mulf %149, %151 : vector<4x256xf32>
      %153 = arith.addf %148, %152 : vector<4x256xf32>
      %c188_i32 = arith.constant 188 : i32
      %154 = tpu.dynamic_rotate %13 by %c188_i32 dim 1 : vector<4x256xf32>, i32 -> vector<4x256xf32>
      %155 = vector.extract_strided_slice %15 {offsets = [0, 28], sizes = [4, 1], strides = [1, 1]} : vector<4x36xf32> to vector<4x1xf32>
      %156 = vector.broadcast %155 : vector<4x1xf32> to vector<4x256xf32>
      %157 = arith.mulf %154, %156 : vector<4x256xf32>
      %158 = arith.addf %153, %157 : vector<4x256xf32>
      %c187_i32 = arith.constant 187 : i32
      %159 = tpu.dynamic_rotate %13 by %c187_i32 dim 1 : vector<4x256xf32>, i32 -> vector<4x256xf32>
      %160 = vector.extract_strided_slice %15 {offsets = [0, 29], sizes = [4, 1], strides = [1, 1]} : vector<4x36xf32> to vector<4x1xf32>
      %161 = vector.broadcast %160 : vector<4x1xf32> to vector<4x256xf32>
      %162 = arith.mulf %159, %161 : vector<4x256xf32>
      %163 = arith.addf %158, %162 : vector<4x256xf32>
      %c176_i32 = arith.constant 176 : i32
      %164 = tpu.dynamic_rotate %13 by %c176_i32 dim 1 : vector<4x256xf32>, i32 -> vector<4x256xf32>
      %165 = vector.extract_strided_slice %15 {offsets = [0, 30], sizes = [4, 1], strides = [1, 1]} : vector<4x36xf32> to vector<4x1xf32>
      %166 = vector.broadcast %165 : vector<4x1xf32> to vector<4x256xf32>
      %167 = arith.mulf %164, %166 : vector<4x256xf32>
      %168 = arith.addf %163, %167 : vector<4x256xf32>
      %c175_i32 = arith.constant 175 : i32
      %169 = tpu.dynamic_rotate %13 by %c175_i32 dim 1 : vector<4x256xf32>, i32 -> vector<4x256xf32>
      %170 = vector.extract_strided_slice %15 {offsets = [0, 31], sizes = [4, 1], strides = [1, 1]} : vector<4x36xf32> to vector<4x1xf32>
      %171 = vector.broadcast %170 : vector<4x1xf32> to vector<4x256xf32>
      %172 = arith.mulf %169, %171 : vector<4x256xf32>
      %173 = arith.addf %168, %172 : vector<4x256xf32>
      %c174_i32 = arith.constant 174 : i32
      %174 = tpu.dynamic_rotate %13 by %c174_i32 dim 1 : vector<4x256xf32>, i32 -> vector<4x256xf32>
      %175 = vector.extract_strided_slice %15 {offsets = [0, 32], sizes = [4, 1], strides = [1, 1]} : vector<4x36xf32> to vector<4x1xf32>
      %176 = vector.broadcast %175 : vector<4x1xf32> to vector<4x256xf32>
      %177 = arith.mulf %174, %176 : vector<4x256xf32>
      %178 = arith.addf %173, %177 : vector<4x256xf32>
      %c173_i32 = arith.constant 173 : i32
      %179 = tpu.dynamic_rotate %13 by %c173_i32 dim 1 : vector<4x256xf32>, i32 -> vector<4x256xf32>
      %180 = vector.extract_strided_slice %15 {offsets = [0, 33], sizes = [4, 1], strides = [1, 1]} : vector<4x36xf32> to vector<4x1xf32>
      %181 = vector.broadcast %180 : vector<4x1xf32> to vector<4x256xf32>
      %182 = arith.mulf %179, %181 : vector<4x256xf32>
      %183 = arith.addf %178, %182 : vector<4x256xf32>
      %c172_i32 = arith.constant 172 : i32
      %184 = tpu.dynamic_rotate %13 by %c172_i32 dim 1 : vector<4x256xf32>, i32 -> vector<4x256xf32>
      %185 = vector.extract_strided_slice %15 {offsets = [0, 34], sizes = [4, 1], strides = [1, 1]} : vector<4x36xf32> to vector<4x1xf32>
      %186 = vector.broadcast %185 : vector<4x1xf32> to vector<4x256xf32>
      %187 = arith.mulf %184, %186 : vector<4x256xf32>
      %188 = arith.addf %183, %187 : vector<4x256xf32>
      %c171_i32 = arith.constant 171 : i32
      %189 = tpu.dynamic_rotate %13 by %c171_i32 dim 1 : vector<4x256xf32>, i32 -> vector<4x256xf32>
      %190 = vector.extract_strided_slice %15 {offsets = [0, 35], sizes = [4, 1], strides = [1, 1]} : vector<4x36xf32> to vector<4x1xf32>
      %191 = vector.broadcast %190 : vector<4x1xf32> to vector<4x256xf32>
      %192 = arith.mulf %189, %191 : vector<4x256xf32>
      %193 = arith.addf %188, %192 : vector<4x256xf32>
      %c0_9 = arith.constant 0 : index
      %c0_10 = arith.constant 0 : index
      %c0_11 = arith.constant 0 : index
      %194 = vector.load %arg10[%c0_9, %c0_10, %c0_11] : memref<1x4x256xf32, #tpu.memory_space<vmem>>, vector<1x4x256xf32>
      %195 = vector.shape_cast %194 : vector<1x4x256xf32> to vector<4x256xf32>
      %196 = vector.shape_cast %193 : vector<4x256xf32> to vector<1x4x256xf32>
      tpu.vector_store %arg10[%c0_9, %c0_10, %c0_11], %196 {strides = array<i32>} : memref<1x4x256xf32, #tpu.memory_space<vmem>>, vector<1x4x256xf32>,
    } else {
    }
    %c1_i32 = arith.constant 1 : i32
    %3 = arith.cmpi eq, %arg1, %c1_i32 : i32
    %4 = arith.extui %3 : i1 to i32
    %c0_i32_1 = arith.constant 0 : i32
    %5 = arith.cmpi ne, %4, %c0_i32_1 : i32
    scf.if %5 {
      %c0 = arith.constant 0 : index
      %c0_4 = arith.constant 0 : index
      %c0_5 = arith.constant 0 : index
      %12 = vector.load %arg4[%c0, %c0_4, %c0_5] : memref<1x8x144xf32, #tpu.memory_space<vmem>>, vector<1x8x144xf32>
      %13 = vector.shape_cast %12 : vector<1x8x144xf32> to vector<8x144xf32>
      %c0_6 = arith.constant 0 : index
      %c0_7 = arith.constant 0 : index
      %c0_8 = arith.constant 0 : index
      %14 = vector.load %arg5[%c0_6, %c0_7, %c0_8] : memref<1x8x16xf32, #tpu.memory_space<vmem>>, vector<1x8x16xf32>
      %15 = vector.shape_cast %14 : vector<1x8x16xf32> to vector<8x16xf32>
      %16 = vector.extract_strided_slice %15 {offsets = [0, 0], sizes = [8, 1], strides = [1, 1]} : vector<8x16xf32> to vector<8x1xf32>
      %17 = vector.broadcast %16 : vector<8x1xf32> to vector<8x144xf32>
      %18 = arith.mulf %13, %17 : vector<8x144xf32>
      %c143_i32 = arith.constant 143 : i32
      %19 = tpu.dynamic_rotate %13 by %c143_i32 dim 1 : vector<8x144xf32>, i32 -> vector<8x144xf32>
      %20 = vector.extract_strided_slice %15 {offsets = [0, 1], sizes = [8, 1], strides = [1, 1]} : vector<8x16xf32> to vector<8x1xf32>
      %21 = vector.broadcast %20 : vector<8x1xf32> to vector<8x144xf32>
      %22 = arith.mulf %19, %21 : vector<8x144xf32>
      %23 = arith.addf %18, %22 : vector<8x144xf32>
      %c142_i32 = arith.constant 142 : i32
      %24 = tpu.dynamic_rotate %13 by %c142_i32 dim 1 : vector<8x144xf32>, i32 -> vector<8x144xf32>
      %25 = vector.extract_strided_slice %15 {offsets = [0, 2], sizes = [8, 1], strides = [1, 1]} : vector<8x16xf32> to vector<8x1xf32>
      %26 = vector.broadcast %25 : vector<8x1xf32> to vector<8x144xf32>
      %27 = arith.mulf %24, %26 : vector<8x144xf32>
      %28 = arith.addf %23, %27 : vector<8x144xf32>
      %c141_i32 = arith.constant 141 : i32
      %29 = tpu.dynamic_rotate %13 by %c141_i32 dim 1 : vector<8x144xf32>, i32 -> vector<8x144xf32>
      %30 = vector.extract_strided_slice %15 {offsets = [0, 3], sizes = [8, 1], strides = [1, 1]} : vector<8x16xf32> to vector<8x1xf32>
      %31 = vector.broadcast %30 : vector<8x1xf32> to vector<8x144xf32>
      %32 = arith.mulf %29, %31 : vector<8x144xf32>
      %33 = arith.addf %28, %32 : vector<8x144xf32>
      %c132_i32 = arith.constant 132 : i32
      %34 = tpu.dynamic_rotate %13 by %c132_i32 dim 1 : vector<8x144xf32>, i32 -> vector<8x144xf32>
      %35 = vector.extract_strided_slice %15 {offsets = [0, 4], sizes = [8, 1], strides = [1, 1]} : vector<8x16xf32> to vector<8x1xf32>
      %36 = vector.broadcast %35 : vector<8x1xf32> to vector<8x144xf32>
      %37 = arith.mulf %34, %36 : vector<8x144xf32>
      %38 = arith.addf %33, %37 : vector<8x144xf32>
      %c131_i32 = arith.constant 131 : i32
      %39 = tpu.dynamic_rotate %13 by %c131_i32 dim 1 : vector<8x144xf32>, i32 -> vector<8x144xf32>
      %40 = vector.extract_strided_slice %15 {offsets = [0, 5], sizes = [8, 1], strides = [1, 1]} : vector<8x16xf32> to vector<8x1xf32>
      %41 = vector.broadcast %40 : vector<8x1xf32> to vector<8x144xf32>
      %42 = arith.mulf %39, %41 : vector<8x144xf32>
      %43 = arith.addf %38, %42 : vector<8x144xf32>
      %c130_i32 = arith.constant 130 : i32
      %44 = tpu.dynamic_rotate %13 by %c130_i32 dim 1 : vector<8x144xf32>, i32 -> vector<8x144xf32>
      %45 = vector.extract_strided_slice %15 {offsets = [0, 6], sizes = [8, 1], strides = [1, 1]} : vector<8x16xf32> to vector<8x1xf32>
      %46 = vector.broadcast %45 : vector<8x1xf32> to vector<8x144xf32>
      %47 = arith.mulf %44, %46 : vector<8x144xf32>
      %48 = arith.addf %43, %47 : vector<8x144xf32>
      %c129_i32 = arith.constant 129 : i32
      %49 = tpu.dynamic_rotate %13 by %c129_i32 dim 1 : vector<8x144xf32>, i32 -> vector<8x144xf32>
      %50 = vector.extract_strided_slice %15 {offsets = [0, 7], sizes = [8, 1], strides = [1, 1]} : vector<8x16xf32> to vector<8x1xf32>
      %51 = vector.broadcast %50 : vector<8x1xf32> to vector<8x144xf32>
      %52 = arith.mulf %49, %51 : vector<8x144xf32>
      %53 = arith.addf %48, %52 : vector<8x144xf32>
      %c120_i32 = arith.constant 120 : i32
      %54 = tpu.dynamic_rotate %13 by %c120_i32 dim 1 : vector<8x144xf32>, i32 -> vector<8x144xf32>
      %55 = vector.extract_strided_slice %15 {offsets = [0, 8], sizes = [8, 1], strides = [1, 1]} : vector<8x16xf32> to vector<8x1xf32>
      %56 = vector.broadcast %55 : vector<8x1xf32> to vector<8x144xf32>
      %57 = arith.mulf %54, %56 : vector<8x144xf32>
      %58 = arith.addf %53, %57 : vector<8x144xf32>
      %c119_i32 = arith.constant 119 : i32
      %59 = tpu.dynamic_rotate %13 by %c119_i32 dim 1 : vector<8x144xf32>, i32 -> vector<8x144xf32>
      %60 = vector.extract_strided_slice %15 {offsets = [0, 9], sizes = [8, 1], strides = [1, 1]} : vector<8x16xf32> to vector<8x1xf32>
      %61 = vector.broadcast %60 : vector<8x1xf32> to vector<8x144xf32>
      %62 = arith.mulf %59, %61 : vector<8x144xf32>
      %63 = arith.addf %58, %62 : vector<8x144xf32>
      %c118_i32 = arith.constant 118 : i32
      %64 = tpu.dynamic_rotate %13 by %c118_i32 dim 1 : vector<8x144xf32>, i32 -> vector<8x144xf32>
      %65 = vector.extract_strided_slice %15 {offsets = [0, 10], sizes = [8, 1], strides = [1, 1]} : vector<8x16xf32> to vector<8x1xf32>
      %66 = vector.broadcast %65 : vector<8x1xf32> to vector<8x144xf32>
      %67 = arith.mulf %64, %66 : vector<8x144xf32>
      %68 = arith.addf %63, %67 : vector<8x144xf32>
      %c117_i32 = arith.constant 117 : i32
      %69 = tpu.dynamic_rotate %13 by %c117_i32 dim 1 : vector<8x144xf32>, i32 -> vector<8x144xf32>
      %70 = vector.extract_strided_slice %15 {offsets = [0, 11], sizes = [8, 1], strides = [1, 1]} : vector<8x16xf32> to vector<8x1xf32>
      %71 = vector.broadcast %70 : vector<8x1xf32> to vector<8x144xf32>
      %72 = arith.mulf %69, %71 : vector<8x144xf32>
      %73 = arith.addf %68, %72 : vector<8x144xf32>
      %c108_i32 = arith.constant 108 : i32
      %74 = tpu.dynamic_rotate %13 by %c108_i32 dim 1 : vector<8x144xf32>, i32 -> vector<8x144xf32>
      %75 = vector.extract_strided_slice %15 {offsets = [0, 12], sizes = [8, 1], strides = [1, 1]} : vector<8x16xf32> to vector<8x1xf32>
      %76 = vector.broadcast %75 : vector<8x1xf32> to vector<8x144xf32>
      %77 = arith.mulf %74, %76 : vector<8x144xf32>
      %78 = arith.addf %73, %77 : vector<8x144xf32>
      %c107_i32 = arith.constant 107 : i32
      %79 = tpu.dynamic_rotate %13 by %c107_i32 dim 1 : vector<8x144xf32>, i32 -> vector<8x144xf32>
      %80 = vector.extract_strided_slice %15 {offsets = [0, 13], sizes = [8, 1], strides = [1, 1]} : vector<8x16xf32> to vector<8x1xf32>
      %81 = vector.broadcast %80 : vector<8x1xf32> to vector<8x144xf32>
      %82 = arith.mulf %79, %81 : vector<8x144xf32>
      %83 = arith.addf %78, %82 : vector<8x144xf32>
      %c106_i32 = arith.constant 106 : i32
      %84 = tpu.dynamic_rotate %13 by %c106_i32 dim 1 : vector<8x144xf32>, i32 -> vector<8x144xf32>
      %85 = vector.extract_strided_slice %15 {offsets = [0, 14], sizes = [8, 1], strides = [1, 1]} : vector<8x16xf32> to vector<8x1xf32>
      %86 = vector.broadcast %85 : vector<8x1xf32> to vector<8x144xf32>
      %87 = arith.mulf %84, %86 : vector<8x144xf32>
      %88 = arith.addf %83, %87 : vector<8x144xf32>
      %c105_i32 = arith.constant 105 : i32
      %89 = tpu.dynamic_rotate %13 by %c105_i32 dim 1 : vector<8x144xf32>, i32 -> vector<8x144xf32>
      %90 = vector.extract_strided_slice %15 {offsets = [0, 15], sizes = [8, 1], strides = [1, 1]} : vector<8x16xf32> to vector<8x1xf32>
      %91 = vector.broadcast %90 : vector<8x1xf32> to vector<8x144xf32>
      %92 = arith.mulf %89, %91 : vector<8x144xf32>
      %93 = arith.addf %88, %92 : vector<8x144xf32>
      %c0_9 = arith.constant 0 : index
      %c0_10 = arith.constant 0 : index
      %c0_11 = arith.constant 0 : index
      %94 = vector.load %arg11[%c0_9, %c0_10, %c0_11] : memref<1x8x144xf32, #tpu.memory_space<vmem>>, vector<1x8x144xf32>
      %95 = vector.shape_cast %94 : vector<1x8x144xf32> to vector<8x144xf32>
      %96 = vector.shape_cast %93 : vector<8x144xf32> to vector<1x8x144xf32>
      tpu.vector_store %arg11[%c0_9, %c0_10, %c0_11], %96 {strides = array<i32>} : memref<1x8x144xf32, #tpu.memory_space<vmem>>, vector<1x8x144xf32>,
    } else {
    }
    %c2_i32 = arith.constant 2 : i32
    %6 = arith.cmpi eq, %arg1, %c2_i32 : i32
    %7 = arith.extui %6 : i1 to i32
    %c0_i32_2 = arith.constant 0 : i32
    %8 = arith.cmpi ne, %7, %c0_i32_2 : i32
    scf.if %8 {
      %c0 = arith.constant 0 : index
      %c0_4 = arith.constant 0 : index
      %c0_5 = arith.constant 0 : index
      %12 = vector.load %arg6[%c0, %c0_4, %c0_5] : memref<1x16x64xf32, #tpu.memory_space<vmem>>, vector<1x16x64xf32>
      %13 = vector.shape_cast %12 : vector<1x16x64xf32> to vector<16x64xf32>
      %c0_6 = arith.constant 0 : index
      %c0_7 = arith.constant 0 : index
      %c0_8 = arith.constant 0 : index
      %14 = vector.load %arg7[%c0_6, %c0_7, %c0_8] : memref<1x16x9xf32, #tpu.memory_space<vmem>>, vector<1x16x9xf32>
      %15 = vector.shape_cast %14 : vector<1x16x9xf32> to vector<16x9xf32>
      %16 = vector.extract_strided_slice %15 {offsets = [0, 0], sizes = [16, 1], strides = [1, 1]} : vector<16x9xf32> to vector<16x1xf32>
      %17 = vector.broadcast %16 : vector<16x1xf32> to vector<16x64xf32>
      %18 = arith.mulf %13, %17 : vector<16x64xf32>
      %c63_i32 = arith.constant 63 : i32
      %19 = tpu.dynamic_rotate %13 by %c63_i32 dim 1 : vector<16x64xf32>, i32 -> vector<16x64xf32>
      %20 = vector.extract_strided_slice %15 {offsets = [0, 1], sizes = [16, 1], strides = [1, 1]} : vector<16x9xf32> to vector<16x1xf32>
      %21 = vector.broadcast %20 : vector<16x1xf32> to vector<16x64xf32>
      %22 = arith.mulf %19, %21 : vector<16x64xf32>
      %23 = arith.addf %18, %22 : vector<16x64xf32>
      %c62_i32 = arith.constant 62 : i32
      %24 = tpu.dynamic_rotate %13 by %c62_i32 dim 1 : vector<16x64xf32>, i32 -> vector<16x64xf32>
      %25 = vector.extract_strided_slice %15 {offsets = [0, 2], sizes = [16, 1], strides = [1, 1]} : vector<16x9xf32> to vector<16x1xf32>
      %26 = vector.broadcast %25 : vector<16x1xf32> to vector<16x64xf32>
      %27 = arith.mulf %24, %26 : vector<16x64xf32>
      %28 = arith.addf %23, %27 : vector<16x64xf32>
      %c56_i32 = arith.constant 56 : i32
      %29 = tpu.dynamic_rotate %13 by %c56_i32 dim 1 : vector<16x64xf32>, i32 -> vector<16x64xf32>
      %30 = vector.extract_strided_slice %15 {offsets = [0, 3], sizes = [16, 1], strides = [1, 1]} : vector<16x9xf32> to vector<16x1xf32>
      %31 = vector.broadcast %30 : vector<16x1xf32> to vector<16x64xf32>
      %32 = arith.mulf %29, %31 : vector<16x64xf32>
      %33 = arith.addf %28, %32 : vector<16x64xf32>
      %c55_i32 = arith.constant 55 : i32
      %34 = tpu.dynamic_rotate %13 by %c55_i32 dim 1 : vector<16x64xf32>, i32 -> vector<16x64xf32>
      %35 = vector.extract_strided_slice %15 {offsets = [0, 4], sizes = [16, 1], strides = [1, 1]} : vector<16x9xf32> to vector<16x1xf32>
      %36 = vector.broadcast %35 : vector<16x1xf32> to vector<16x64xf32>
      %37 = arith.mulf %34, %36 : vector<16x64xf32>
      %38 = arith.addf %33, %37 : vector<16x64xf32>
      %c54_i32 = arith.constant 54 : i32
      %39 = tpu.dynamic_rotate %13 by %c54_i32 dim 1 : vector<16x64xf32>, i32 -> vector<16x64xf32>
      %40 = vector.extract_strided_slice %15 {offsets = [0, 5], sizes = [16, 1], strides = [1, 1]} : vector<16x9xf32> to vector<16x1xf32>
      %41 = vector.broadcast %40 : vector<16x1xf32> to vector<16x64xf32>
      %42 = arith.mulf %39, %41 : vector<16x64xf32>
      %43 = arith.addf %38, %42 : vector<16x64xf32>
      %c48_i32 = arith.constant 48 : i32
      %44 = tpu.dynamic_rotate %13 by %c48_i32 dim 1 : vector<16x64xf32>, i32 -> vector<16x64xf32>
      %45 = vector.extract_strided_slice %15 {offsets = [0, 6], sizes = [16, 1], strides = [1, 1]} : vector<16x9xf32> to vector<16x1xf32>
      %46 = vector.broadcast %45 : vector<16x1xf32> to vector<16x64xf32>
      %47 = arith.mulf %44, %46 : vector<16x64xf32>
      %48 = arith.addf %43, %47 : vector<16x64xf32>
      %c47_i32 = arith.constant 47 : i32
      %49 = tpu.dynamic_rotate %13 by %c47_i32 dim 1 : vector<16x64xf32>, i32 -> vector<16x64xf32>
      %50 = vector.extract_strided_slice %15 {offsets = [0, 7], sizes = [16, 1], strides = [1, 1]} : vector<16x9xf32> to vector<16x1xf32>
      %51 = vector.broadcast %50 : vector<16x1xf32> to vector<16x64xf32>
      %52 = arith.mulf %49, %51 : vector<16x64xf32>
      %53 = arith.addf %48, %52 : vector<16x64xf32>
      %c46_i32 = arith.constant 46 : i32
      %54 = tpu.dynamic_rotate %13 by %c46_i32 dim 1 : vector<16x64xf32>, i32 -> vector<16x64xf32>
      %55 = vector.extract_strided_slice %15 {offsets = [0, 8], sizes = [16, 1], strides = [1, 1]} : vector<16x9xf32> to vector<16x1xf32>
      %56 = vector.broadcast %55 : vector<16x1xf32> to vector<16x64xf32>
      %57 = arith.mulf %54, %56 : vector<16x64xf32>
      %58 = arith.addf %53, %57 : vector<16x64xf32>
      %c0_9 = arith.constant 0 : index
      %c0_10 = arith.constant 0 : index
      %c0_11 = arith.constant 0 : index
      %59 = vector.load %arg12[%c0_9, %c0_10, %c0_11] : memref<1x16x64xf32, #tpu.memory_space<vmem>>, vector<1x16x64xf32>
      %60 = vector.shape_cast %59 : vector<1x16x64xf32> to vector<16x64xf32>
      %61 = vector.shape_cast %58 : vector<16x64xf32> to vector<1x16x64xf32>
      tpu.vector_store %arg12[%c0_9, %c0_10, %c0_11], %61 {strides = array<i32>} : memref<1x16x64xf32, #tpu.memory_space<vmem>>, vector<1x16x64xf32>,
    } else {
    }
    %c3_i32 = arith.constant 3 : i32
    %9 = arith.cmpi eq, %arg1, %c3_i32 : i32
    %10 = arith.extui %9 : i1 to i32
    %c0_i32_3 = arith.constant 0 : i32
    %11 = arith.cmpi ne, %10, %c0_i32_3 : i32
    scf.if %11 {
      %c0 = arith.constant 0 : index
      %c0_4 = arith.constant 0 : index
      %c0_5 = arith.constant 0 : index
      %12 = vector.load %arg8[%c0, %c0_4, %c0_5] : memref<1x32x36xf32, #tpu.memory_space<vmem>>, vector<1x32x36xf32>
      %13 = vector.shape_cast %12 : vector<1x32x36xf32> to vector<32x36xf32>
      %c0_6 = arith.constant 0 : index
      %c0_7 = arith.constant 0 : index
      %c0_8 = arith.constant 0 : index
      %14 = vector.load %arg9[%c0_6, %c0_7, %c0_8] : memref<1x32x9xf32, #tpu.memory_space<vmem>>, vector<1x32x9xf32>
      %15 = vector.shape_cast %14 : vector<1x32x9xf32> to vector<32x9xf32>
      %16 = vector.extract_strided_slice %15 {offsets = [0, 0], sizes = [32, 1], strides = [1, 1]} : vector<32x9xf32> to vector<32x1xf32>
      %17 = vector.broadcast %16 : vector<32x1xf32> to vector<32x36xf32>
      %18 = arith.mulf %13, %17 : vector<32x36xf32>
      %c35_i32 = arith.constant 35 : i32
      %19 = tpu.dynamic_rotate %13 by %c35_i32 dim 1 : vector<32x36xf32>, i32 -> vector<32x36xf32>
      %20 = vector.extract_strided_slice %15 {offsets = [0, 1], sizes = [32, 1], strides = [1, 1]} : vector<32x9xf32> to vector<32x1xf32>
      %21 = vector.broadcast %20 : vector<32x1xf32> to vector<32x36xf32>
      %22 = arith.mulf %19, %21 : vector<32x36xf32>
      %23 = arith.addf %18, %22 : vector<32x36xf32>
      %c34_i32 = arith.constant 34 : i32
      %24 = tpu.dynamic_rotate %13 by %c34_i32 dim 1 : vector<32x36xf32>, i32 -> vector<32x36xf32>
      %25 = vector.extract_strided_slice %15 {offsets = [0, 2], sizes = [32, 1], strides = [1, 1]} : vector<32x9xf32> to vector<32x1xf32>
      %26 = vector.broadcast %25 : vector<32x1xf32> to vector<32x36xf32>
      %27 = arith.mulf %24, %26 : vector<32x36xf32>
      %28 = arith.addf %23, %27 : vector<32x36xf32>
      %c30_i32 = arith.constant 30 : i32
      %29 = tpu.dynamic_rotate %13 by %c30_i32 dim 1 : vector<32x36xf32>, i32 -> vector<32x36xf32>
      %30 = vector.extract_strided_slice %15 {offsets = [0, 3], sizes = [32, 1], strides = [1, 1]} : vector<32x9xf32> to vector<32x1xf32>
      %31 = vector.broadcast %30 : vector<32x1xf32> to vector<32x36xf32>
      %32 = arith.mulf %29, %31 : vector<32x36xf32>
      %33 = arith.addf %28, %32 : vector<32x36xf32>
      %c29_i32 = arith.constant 29 : i32
      %34 = tpu.dynamic_rotate %13 by %c29_i32 dim 1 : vector<32x36xf32>, i32 -> vector<32x36xf32>
      %35 = vector.extract_strided_slice %15 {offsets = [0, 4], sizes = [32, 1], strides = [1, 1]} : vector<32x9xf32> to vector<32x1xf32>
      %36 = vector.broadcast %35 : vector<32x1xf32> to vector<32x36xf32>
      %37 = arith.mulf %34, %36 : vector<32x36xf32>
      %38 = arith.addf %33, %37 : vector<32x36xf32>
      %c28_i32 = arith.constant 28 : i32
      %39 = tpu.dynamic_rotate %13 by %c28_i32 dim 1 : vector<32x36xf32>, i32 -> vector<32x36xf32>
      %40 = vector.extract_strided_slice %15 {offsets = [0, 5], sizes = [32, 1], strides = [1, 1]} : vector<32x9xf32> to vector<32x1xf32>
      %41 = vector.broadcast %40 : vector<32x1xf32> to vector<32x36xf32>
      %42 = arith.mulf %39, %41 : vector<32x36xf32>
      %43 = arith.addf %38, %42 : vector<32x36xf32>
      %c24_i32 = arith.constant 24 : i32
      %44 = tpu.dynamic_rotate %13 by %c24_i32 dim 1 : vector<32x36xf32>, i32 -> vector<32x36xf32>
      %45 = vector.extract_strided_slice %15 {offsets = [0, 6], sizes = [32, 1], strides = [1, 1]} : vector<32x9xf32> to vector<32x1xf32>
      %46 = vector.broadcast %45 : vector<32x1xf32> to vector<32x36xf32>
      %47 = arith.mulf %44, %46 : vector<32x36xf32>
      %48 = arith.addf %43, %47 : vector<32x36xf32>
      %c23_i32 = arith.constant 23 : i32
      %49 = tpu.dynamic_rotate %13 by %c23_i32 dim 1 : vector<32x36xf32>, i32 -> vector<32x36xf32>
      %50 = vector.extract_strided_slice %15 {offsets = [0, 7], sizes = [32, 1], strides = [1, 1]} : vector<32x9xf32> to vector<32x1xf32>
      %51 = vector.broadcast %50 : vector<32x1xf32> to vector<32x36xf32>
      %52 = arith.mulf %49, %51 : vector<32x36xf32>
      %53 = arith.addf %48, %52 : vector<32x36xf32>
      %c22_i32 = arith.constant 22 : i32
      %54 = tpu.dynamic_rotate %13 by %c22_i32 dim 1 : vector<32x36xf32>, i32 -> vector<32x36xf32>
      %55 = vector.extract_strided_slice %15 {offsets = [0, 8], sizes = [32, 1], strides = [1, 1]} : vector<32x9xf32> to vector<32x1xf32>
      %56 = vector.broadcast %55 : vector<32x1xf32> to vector<32x36xf32>
      %57 = arith.mulf %54, %56 : vector<32x36xf32>
      %58 = arith.addf %53, %57 : vector<32x36xf32>
      %c0_9 = arith.constant 0 : index
      %c0_10 = arith.constant 0 : index
      %c0_11 = arith.constant 0 : index
      %59 = vector.load %arg13[%c0_9, %c0_10, %c0_11] : memref<1x32x36xf32, #tpu.memory_space<vmem>>, vector<1x32x36xf32>
      %60 = vector.shape_cast %59 : vector<1x32x36xf32> to vector<32x36xf32>
      %61 = vector.shape_cast %58 : vector<32x36xf32> to vector<1x32x36xf32>
      tpu.vector_store %arg13[%c0_9, %c0_10, %c0_11], %61 {strides = array<i32>} : memref<1x32x36xf32, #tpu.memory_space<vmem>>, vector<1x32x36xf32>,
    } else {
    }
    return
  }
  func.func @transform_0(%arg0: i32, %arg1: i32) -> (i32, i32, i32) {
    %c0_i32 = arith.constant 0 : i32
    %c0_i32_0 = arith.constant 0 : i32
    %c0_i32_1 = arith.constant 0 : i32
    return %arg0, %c0_i32, %c0_i32_0 : i32, i32, i32
  }
  func.func @transform_1(%arg0: i32, %arg1: i32) -> (i32, i32, i32) {
    %c0_i32 = arith.constant 0 : i32
    %c0_i32_0 = arith.constant 0 : i32
    %c0_i32_1 = arith.constant 0 : i32
    return %arg0, %c0_i32, %c0_i32_0 : i32, i32, i32
  }
  func.func @transform_2(%arg0: i32, %arg1: i32) -> (i32, i32, i32) {
    %c0_i32 = arith.constant 0 : i32
    %c0_i32_0 = arith.constant 0 : i32
    %c0_i32_1 = arith.constant 0 : i32
    return %arg0, %c0_i32, %c0_i32_0 : i32, i32, i32
  }
  func.func @transform_3(%arg0: i32, %arg1: i32) -> (i32, i32, i32) {
    %c0_i32 = arith.constant 0 : i32
    %c0_i32_0 = arith.constant 0 : i32
    %c0_i32_1 = arith.constant 0 : i32
    return %arg0, %c0_i32, %c0_i32_0 : i32, i32, i32
  }
  func.func @transform_4(%arg0: i32, %arg1: i32) -> (i32, i32, i32) {
    %c0_i32 = arith.constant 0 : i32
    %c0_i32_0 = arith.constant 0 : i32
    %c0_i32_1 = arith.constant 0 : i32
    return %arg0, %c0_i32, %c0_i32_0 : i32, i32, i32
  }
  func.func @transform_5(%arg0: i32, %arg1: i32) -> (i32, i32, i32) {
    %c0_i32 = arith.constant 0 : i32
    %c0_i32_0 = arith.constant 0 : i32
    %c0_i32_1 = arith.constant 0 : i32
    return %arg0, %c0_i32, %c0_i32_0 : i32, i32, i32
  }
  func.func @transform_6(%arg0: i32, %arg1: i32) -> (i32, i32, i32) {
    %c0_i32 = arith.constant 0 : i32
    %c0_i32_0 = arith.constant 0 : i32
    %c0_i32_1 = arith.constant 0 : i32
    return %arg0, %c0_i32, %c0_i32_0 : i32, i32, i32
  }
  func.func @transform_7(%arg0: i32, %arg1: i32) -> (i32, i32, i32) {
    %c0_i32 = arith.constant 0 : i32
    %c0_i32_0 = arith.constant 0 : i32
    %c0_i32_1 = arith.constant 0 : i32
    return %arg0, %c0_i32, %c0_i32_0 : i32, i32, i32
  }
  func.func @transform_8(%arg0: i32, %arg1: i32) -> (i32, i32, i32) {
    %c0_i32 = arith.constant 0 : i32
    %c0_i32_0 = arith.constant 0 : i32
    %c0_i32_1 = arith.constant 0 : i32
    return %arg0, %c0_i32, %c0_i32_0 : i32, i32, i32
  }
  func.func @transform_9(%arg0: i32, %arg1: i32) -> (i32, i32, i32) {
    %c0_i32 = arith.constant 0 : i32
    %c0_i32_0 = arith.constant 0 : i32
    %c0_i32_1 = arith.constant 0 : i32
    return %arg0, %c0_i32, %c0_i32_0 : i32, i32, i32
  }
  func.func @transform_10(%arg0: i32, %arg1: i32) -> (i32, i32, i32) {
    %c0_i32 = arith.constant 0 : i32
    %c0_i32_0 = arith.constant 0 : i32
    %c0_i32_1 = arith.constant 0 : i32
    return %arg0, %c0_i32, %c0_i32_0 : i32, i32, i32
  }
  func.func @transform_11(%arg0: i32, %arg1: i32) -> (i32, i32, i32) {
    %c0_i32 = arith.constant 0 : i32
    %c0_i32_0 = arith.constant 0 : i32
    %c0_i32_1 = arith.constant 0 : i32
    return %arg0, %c0_i32, %c0_i32_0 : i32, i32, i32
  }
}

</mosaic_0001>

<bundles_post_ra>
// kernel: _match_pallas.1
= control target key start
LH: loop header
LB: loop body
LE: loop exit
PB: predicated region body
PF: predicated region fallthrough
CT: control target
= control target key end

     0   :  { %s2897_s17 = smov 0   ;;  %s2899_s18 = smov 0   ;;  %s3416_s0 = inlined_call_operand.vmem [shape: f32[2,4,256], index: 0, kind: input, shape index: {}]   ;;  %s3417_s1 = inlined_call_operand.vmem [shape: f32[2,4,36], index: 1, kind: input, shape index: {}]   ;;  %s3418_s2 = inlined_call_operand.vmem [shape: f32[2,8,144], index: 2, kind: input, shape index: {}]   ;;  %s3419_s3 = inlined_call_operand.vmem [shape: f32[2,8,16], index: 3, kind: input, shape index: {}]   ;;  %s3420_s4 = inlined_call_operand.vmem [shape: f32[2,16,64], index: 4, kind: input, shape index: {}]   ;;  %s3421_s5 = inlined_call_operand.vmem [shape: f32[2,16,9], index: 5, kind: input, shape index: {}]   ;;  %s3422_s6 = inlined_call_operand.vmem [shape: f32[2,32,36], index: 6, kind: input, shape index: {}]   ;;  %s3423_s7 = inlined_call_operand.vmem [shape: f32[2,32,9], index: 7, kind: input, shape index: {}]   ;;  %s3424_s8 = inlined_call_operand.vmem [shape: f32[2,4,256], index: 8, kind: output, shape index: {0}]   ;;  %s3425_s9 = inlined_call_operand.vmem [shape: f32[2,8,144], index: 9, kind: output, shape index: {1}]   ;;  %s3426_s10 = inlined_call_operand.vmem [shape: f32[2,16,64], index: 10, kind: output, shape index: {2}]   ;;  %s3427_s11 = inlined_call_operand.vmem [shape: f32[2,32,36], index: 11, kind: output, shape index: {3}]  }
   0x1   :  { %3431 = sst [smem:[#allocation8_spill]] %s3416_s0  ;;  %s2901_s19 = smov 0  }
   0x2   :  { %3432 = sst [smem:[#allocation9_spill]] %s3417_s1  ;;  %s2903_s20 = smov 0  }
   0x3   :  { %3433 = sst [smem:[#allocation10_spill]] %s3418_s2  ;;  %s2905_s21 = smov 0  }
   0x4   :  { %3434 = sst [smem:[#allocation11_spill]] %s3420_s4 }
   0x5 LB: > { %3435 = sst [smem:[#allocation2_spill]] %s2679_s17  ;;  %s31_s22 = sadd.s32 1, %s2687_s19  ;;  %s2695_s21 = sphi %s2905_s21, %s22_s21   ;;  %s2691_s20 = sphi %s2903_s20, %s3454_s20   ;;  %s2687_s19 = sphi %s2901_s19, %s3453_s19   ;;  %s2683_s18 = sphi %s2899_s18, %s3452_s18   ;;  %s2679_s17 = sphi %s2897_s17, %s3451_s17  }
   0x6   : > { %3436 = sst [smem:[#allocation3_spill]] %s2687_s19  ;;  %s34_s23 = sadd.s32 1, %s2691_s20 }
   0x7   : > { %3437 = sst [smem:[#allocation4_spill]] %s2691_s20  ;;  %p32_p0 = scmp.ge.s32.totalorder %s31_s22, 4 }
   0x8   : > { %3438 = sst [smem:[#allocation5_spill]] %s2695_s21  ;;  %p2351_p1 = scmp.ge.s32.totalorder %s2695_s21, 1 }
   0x9   : > { %p424_p2 = scmp.lt.s32.totalorder %s2695_s21, 9  ;;  %s3456_s22 = smov (%p32_p0, %s31_s22), 0 }
   0xa   : > { %3439 = sst [smem:[#allocation6_spill]] %s3456_s22  ;;  %s3458_s23 = smov (!%p32_p0, %s34_s23), %s2691_s20 }
   0xb   : > { %p425_p3 = pnand %p2351_p1, %p424_p2  ;;  %p36_p4 = scmp.ge.s32.totalorder %s3458_s23, 2 }
   0xc   : > { %p512_p5 = scmp.lt.s32.totalorder (!%p425_p3), %s2683_s18, 1  ;;  %s3441_s0 = sld [smem:[#allocation8_spill]] (!%p425_p3) }
   0xd   : > { %s3460_s23 = smov (%p36_p4, %s3458_s23), 0  ;;  %428 = sbr.rel (%p425_p3) target bundleno = 1612 (0x64c), region = 52 }
   0xe   : > { %3440 = sst [smem:[#allocation7_spill]] %s3460_s23  ;;  %s3442_s1 = sld [smem:[#allocation9_spill]] (!%p425_p3) }
   0xf   : > { %s3443_s2 = sld [smem:[#allocation10_spill]] (!%p425_p3)  ;;  %s3444_s4 = sld [smem:[#allocation11_spill]] (!%p425_p3) }
  0x10   : > { %s3445_s22 = sld [smem:[#allocation2_spill]] (!%p425_p3) }
  0x14   : > { %s3462_s18 = smov (!%p512_p5, %s2683_s18), 1 }
  0x15   : > { %s2929_s24 = sshll.u32 %s3462_s18, 3  ;;  %s2354_s25 = sshll.u32 %s3462_s18, 2 }
  0x16   : > { %s516_s28 = scalar_lea.vmem %s3441_s0, %s2929_s24  ;;  %s520_s12 = scalar_lea.vmem %s3442_s1, %s2354_s25 }
  0x17   : > { %s2381_s13 = sshll.u32 %s3462_s18, 4  ;;  %s2384_s25 = sshll.u32 %s3462_s18, 5 }
  0x18   : > { %s2945_s20 = scalar_lea.vmem %s3443_s2, %s2381_s13  ;;  %s2950_s17 = scalar_lea.vmem %s3444_s4, %s2381_s13 }
  0x19   : > { %s2955_s29 = scalar_lea.vmem %s3421_s5, %s2381_s13  ;;  %s2960_s14 = scalar_lea.vmem %s3422_s6, %s2384_s25 }
  0x1a   : > { %s2965_s23 = scalar_lea.vmem %s3423_s7, %s2384_s25  ;;  %s554_s21 = scalar_lea.vmem %s3424_s8, %s2929_s24 }
  0x1b   : > { %s2974_s26 = scalar_lea.vmem %s3425_s9, %s2381_s13  ;;  %s2979_s0 = scalar_lea.vmem %s3426_s10, %s2381_s13 }
  0x1c   : > { %s2984_s15 = scalar_lea.vmem %s3427_s11, %s2384_s25  ;;  %p2374_p6 = scmp.ne.s32.totalorder %s3445_s22, 0 }
  0x1d   : > { %v2987_v0 = vld [vmem:[%s520_s12] sm:$0xf] (!%p2374_p6)  ;;  %v2697_v2 = vmov (!%p2374_p6), 0   ;;  %v2698_v4 = vmov (!%p2374_p6), 1   ;;  %s2699_s1 = smov (!%p2374_p6), 127   ;;  %v2700_v5 = vmov (!%p2374_p6), 2   ;;  %v583_v30 = vlaneseq (!%p2374_p6) }
  0x1e   : > { %573 = sbr.rel (%p2374_p6) target bundleno = 442 (0x1ba), region = 56  ;;  %v2989_v1 = vld [vmem:[%s516_s28] sm:$0xff] (!%p2374_p6)  ;;  %2570 = vset.pattern.permute.xlu0 (!%p2374_p6), %v2697_v2  ;;  %2571 = vset.pattern.permute.xlu1 (!%p2374_p6), %v2698_v4  ;;  %s2701_s2 = smov (!%p2374_p6), 126   ;;  %v2703_v6 = vmov (!%p2374_p6), 3   ;;  %v2705_v7 = vmov (!%p2374_p6), 4   ;;  %v2706_v8 = vmov (!%p2374_p6), 5  }
  0x1f   : > { %v2993_v3 = vcombine.high (!%p2374_p6), %v2989_v1, %v2989_v1  ;;  %578 = vperm.xlu0 (!%p2374_p6), %2570, %v2987_v0   ;;  %s2702_s4 = smov (!%p2374_p6), 125   ;;  %s2704_s28 = smov (!%p2374_p6), 124   ;;  %v2708_v9 = vmov (!%p2374_p6), 6   ;;  %v2709_v10 = vmov (!%p2374_p6), 7   ;;  %v2711_v11 = vmov (!%p2374_p6), 8  }
  0x20   : > { %s2707_s12 = smov (!%p2374_p6), 123   ;;  %s2710_s13 = smov (!%p2374_p6), 112   ;;  %v2713_v12 = vmov (!%p2374_p6), 9   ;;  %v2714_v13 = vmov (!%p2374_p6), 10   ;;  %v2716_v14 = vmov (!%p2374_p6), 11   ;;  %v2717_v15 = vmov (!%p2374_p6), 25  }
  0x21   : > { %594 = vrot.lane.b32.xlu1 (!%p2374_p6), %v2993_v3, %s2699_s1  ;;  %s2712_s16 = smov (!%p2374_p6), 111   ;;  %s2715_s25 = smov (!%p2374_p6), 110   ;;  %v2719_v16 = vmov (!%p2374_p6), 12   ;;  %v2720_v17 = vmov (!%p2374_p6), 13   ;;  %v2722_v18 = vmov (!%p2374_p6), 14   ;;  %v2723_v19 = vmov (!%p2374_p6), 15  }
  0x22   : > { %s2718_s19 = smov (!%p2374_p6), 109   ;;  %s2721_s18 = smov (!%p2374_p6), 108   ;;  %v2725_v20 = vmov (!%p2374_p6), 16   ;;  %v2727_v21 = vmov (!%p2374_p6), 17   ;;  %v2728_v22 = vmov (!%p2374_p6), 18   ;;  %v2730_v23 = vmov (!%p2374_p6), 19  }
  0x23   : > { %592 = vrot.lane.b32.xlu0 (!%p2374_p6), %v2989_v1, %s2699_s1  ;;  %s2724_s27 = smov (!%p2374_p6), 107   ;;  %s2726_s30 = smov (!%p2374_p6), 96   ;;  %v2732_v24 = vmov (!%p2374_p6), 20   ;;  %v2733_v25 = vmov (!%p2374_p6), 21   ;;  %v2735_v26 = vmov (!%p2374_p6), 22   ;;  %v2736_v27 = vmov (!%p2374_p6), 23  }
  0x24   : > { %2572 = vset.pattern.permute.xlu0 (!%p2374_p6), %v2700_v5  ;;  %s2729_s22 = smov (!%p2374_p6), 95   ;;  %s2731_s1 = smov (!%p2374_p6), 94   ;;  %v2738_v28 = vmov (!%p2374_p6), 839922192   ;;  %v584_v32 = vshrl.u32 (!%p2374_p6), %v583_v30, 7  ;;  %v2739_v33 = vmov (!%p2374_p6), 24  }
  0x25   : > { %602 = vperm.xlu1 %2571, %v2987_v0   ;;  %v581_v29 = vunpack.c.l.s4 %v2738_v28  ;;  %v3053_v35 = vand.u32 127, %v583_v30  ;;  %v2741_v36 = vmov 27   ;;  %v2742_v41 = vmov 28  }
  0x26   : > { %v2744_v51 = vmov 29   ;;  %v2746_v59 = vmov 30  }
  0x27   : > { %612 = vrot.lane.b32.xlu0 %v2989_v1, %s2701_s2  ;;  %v582_v31 = vunpack.c.0.s8 %v581_v29  ;;  %vm598_vm0 = vcmp.lt.s32.totalorder %v3053_v35, 127  ;;  %vm616_vm1 = vcmp.lt.s32.totalorder %v3053_v35, 126  ;;  %vm634_vm2 = vcmp.lt.s32.totalorder %v3053_v35, 125 }
  0x28   : > { %vm652_vm3 = vcmp.lt.s32.totalorder %v3053_v35, 124  ;;  %vm670_vm4 = vcmp.lt.s32.totalorder %v3053_v35, 123  ;;  %vm688_vm5 = vcmp.lt.s32.totalorder %v3053_v35, 112  ;;  %vm706_vm6 = vcmp.lt.s32.totalorder %v3053_v35, 111 }
  0x29   : > { %614 = vrot.lane.b32.xlu1 %v2993_v3, %s2701_s2  ;;  %s2734_s2 = smov 93   ;;  %v585_v34 = vsub.s32 %v582_v31, %v584_v32  ;;  %vm724_vm7 = vcmp.lt.s32.totalorder %v3053_v35, 110  ;;  %vm742_vm8 = vcmp.lt.s32.totalorder %v3053_v35, 109  ;;  %vm760_vm9 = vcmp.lt.s32.totalorder %v3053_v35, 108 }
  0x2a   : > { %2595 = vset.pattern.permute.xlu1 %v2717_v15  ;;  %vm778_vm10 = vcmp.lt.s32.totalorder %v3053_v35, 107  ;;  %vm796_vm11 = vcmp.lt.s32.totalorder %v3053_v35, 96  ;;  %vm814_vm12 = vcmp.lt.s32.totalorder %v3053_v35, 95  ;;  %vm832_vm13 = vcmp.lt.s32.totalorder %v3053_v35, 94 }
  0x2b   : > { %620 = vperm.xlu0 %2572, %v2987_v0   ;;  %vm850_vm14 = vcmp.lt.s32.totalorder %v3053_v35, 93  ;;  %vm868_vm15 = vcmp.lt.s32.totalorder %v3053_v35, 92 }
  0x2d   : > { %630 = vrot.lane.b32.xlu1 %v2989_v1, %s2702_s4 }
  0x2f   : > { %2573 = vset.pattern.permute.xlu0 %v2703_v6 }
  0x30   : > { %638 = vperm.xlu0 %2573, %v2987_v0  }
  0x31   : > { %632 = vrot.lane.b32.xlu1 %v2993_v3, %s2702_s4  ;;  %s2737_s4 = smov 92  }
  0x34   : > { %2574 = vset.pattern.permute.xlu0 %v2705_v7  ;;  %v2747_v7 = vmov 31  }
  0x35   : > { %648 = vrot.lane.b32.xlu1 %v2989_v1, %s2704_s28  ;;  %656 = vperm.xlu0 %2574, %v2987_v0  }
  0x39   : > { %650 = vrot.lane.b32.xlu1 %v2993_v3, %s2704_s28  ;;  %2575 = vset.pattern.permute.xlu0 %v2706_v8  ;;  %s2740_s28 = smov 91  }
  0x3a   : > { %674 = vperm.xlu0 %2575, %v2987_v0  }
  0x3d   : > { %666 = vrot.lane.b32.xlu1 %v2989_v1, %s2707_s12 }
  0x3e   : > { %2576 = vset.pattern.permute.xlu0 %v2708_v9 }
  0x3f   : > { %692 = vperm.xlu0 %2576, %v2987_v0  }
  0x41   : > { %668 = vrot.lane.b32.xlu1 %v2993_v3, %s2707_s12  ;;  %s2743_s12 = smov 80  }
  0x43   : > { %2577 = vset.pattern.permute.xlu0 %v2709_v10 }
  0x44   : > { %710 = vperm.xlu0 %2577, %v2987_v0  }
  0x45   : > { %684 = vrot.lane.b32.xlu1 %v2989_v1, %s2710_s13 }
  0x48   : > { %2578 = vset.pattern.permute.xlu0 %v2711_v11  ;;  %v2749_v11 = vmov 32  }
  0x49   : > { %686 = vrot.lane.b32.xlu1 %v2993_v3, %s2710_s13  ;;  %728 = vperm.xlu0 %2578, %v2987_v0   ;;  %s2745_s13 = smov 79  }
  0x4d   : > { %702 = vrot.lane.b32.xlu1 %v2989_v1, %s2712_s16  ;;  %2579 = vset.pattern.permute.xlu0 %v2713_v12 }
  0x4e   : > { %746 = vperm.xlu0 %2579, %v2987_v0  }
  0x51   : > { %704 = vrot.lane.b32.xlu1 %v2993_v3, %s2712_s16  ;;  %s2748_s16 = smov 78  }
  0x52   : > { %2580 = vset.pattern.permute.xlu0 %v2714_v13 }
  0x53   : > { %764 = vperm.xlu0 %2580, %v2987_v0  }
  0x55   : > { %720 = vrot.lane.b32.xlu1 %v2989_v1, %s2715_s25 }
  0x57   : > { %2581 = vset.pattern.permute.xlu0 %v2716_v14  ;;  %v2750_v14 = vmov 33  }
  0x58   : > { %782 = vperm.xlu0 %2581, %v2987_v0  }
  0x59   : > { %722 = vrot.lane.b32.xlu1 %v2993_v3, %s2715_s25  ;;  %s2751_s25 = smov 77  }
  0x5c   : > { %2582 = vset.pattern.permute.xlu0 %v2719_v16  ;;  %v2752_v16 = vmov 34  }
  0x5d   : > { %738 = vrot.lane.b32.xlu1 %v2989_v1, %s2718_s19  ;;  %800 = vperm.xlu0 %2582, %v2987_v0  }
  0x61   : > { %740 = vrot.lane.b32.xlu1 %v2993_v3, %s2718_s19  ;;  %2583 = vset.pattern.permute.xlu0 %v2720_v17  ;;  %s2753_s19 = smov 76  }
  0x62   : > { %818 = vperm.xlu0 %2583, %v2987_v0  }
  0x65   : > { %756 = vrot.lane.b32.xlu1 %v2989_v1, %s2721_s18 }
  0x66   : > { %2584 = vset.pattern.permute.xlu0 %v2722_v18  ;;  %v2754_v18 = vmov 35  }
  0x67   : > { %836 = vperm.xlu0 %2584, %v2987_v0  }
  0x69   : > { %758 = vrot.lane.b32.xlu1 %v2993_v3, %s2721_s18  ;;  %s2755_s18 = smov 44  }
  0x6b   : > { %2585 = vset.pattern.permute.xlu0 %v2723_v19 }
  0x6c   : > { %854 = vperm.xlu0 %2585, %v2987_v0  }
  0x6d   : > { %774 = vrot.lane.b32.xlu1 %v2989_v1, %s2724_s27 }
  0x70   : > { %2586 = vset.pattern.permute.xlu0 %v2725_v20 }
  0x71   : > { %776 = vrot.lane.b32.xlu1 %v2993_v3, %s2724_s27  ;;  %872 = vperm.xlu0 %2586, %v2987_v0   ;;  %s2756_s27 = smov 75  }
  0x75   : > { %792 = vrot.lane.b32.xlu1 %v2989_v1, %s2726_s30  ;;  %2587 = vset.pattern.permute.xlu0 %v2727_v21 }
  0x76   : > { %890 = vperm.xlu0 %2587, %v2987_v0  }
  0x79   : > { %794 = vrot.lane.b32.xlu1 %v2993_v3, %s2726_s30  ;;  %s2757_s30 = smov 43  }
  0x7a   : > { %2588 = vset.pattern.permute.xlu0 %v2728_v22 }
  0x7b   : > { %908 = vperm.xlu0 %2588, %v2987_v0  }
  0x7d   : > { %810 = vrot.lane.b32.xlu1 %v2989_v1, %s2729_s22 }
  0x7f   : > { %2589 = vset.pattern.permute.xlu0 %v2730_v23 }
  0x80   : > { %926 = vperm.xlu0 %2589, %v2987_v0  }
  0x81   : > { %812 = vrot.lane.b32.xlu1 %v2993_v3, %s2729_s22  ;;  %s2758_s22 = smov 64  }
  0x84   : > { %2590 = vset.pattern.permute.xlu0 %v2732_v24 }
  0x85   : > { %828 = vrot.lane.b32.xlu1 %v2989_v1, %s2731_s1  ;;  %944 = vperm.xlu0 %2590, %v2987_v0  }
  0x89   : > { %830 = vrot.lane.b32.xlu1 %v2993_v3, %s2731_s1  ;;  %2591 = vset.pattern.permute.xlu0 %v2733_v25  ;;  %s2760_s1 = smov 63  }
  0x8a   : > { %962 = vperm.xlu0 %2591, %v2987_v0  }
  0x8d   : > { %846 = vrot.lane.b32.xlu1 %v2989_v1, %s2734_s2 }
  0x8e   : > { %2592 = vset.pattern.permute.xlu0 %v2735_v26 }
  0x8f   : > { %980 = vperm.xlu0 %2592, %v2987_v0  }
  0x91   : > { %848 = vrot.lane.b32.xlu1 %v2993_v3, %s2734_s2  ;;  %s2761_s2 = smov 62  }
  0x93   : > { %2593 = vset.pattern.permute.xlu0 %v2736_v27  ;;  %v595_v38 = vpop.permute.xlu1 %594 }
  0x94   : > { %998 = vperm.xlu0 %2593, %v2987_v0  }
  0x95   : > { %864 = vrot.lane.b32.xlu1 %v2989_v1, %s2737_s4 }
  0x98   : > { %2594 = vset.pattern.permute.xlu0 %v2739_v33 }
  0x99   : > { %866 = vrot.lane.b32.xlu1 %v2993_v3, %s2737_s4  ;;  %1016 = vperm.xlu0 %2594, %v2987_v0   ;;  %s2762_s4 = smov 61  }
  0x9d   : > { %882 = vrot.lane.b32.xlu1 %v2989_v1, %s2740_s28  ;;  %2597 = vset.pattern.permute.xlu0 %v2741_v36 }
  0x9e   : > { %v579_v37 = vpop.permute.xlu0 %578  ;;  %1070 = vperm.xlu0 %2597, %v2987_v0  }
  0x9f   : > { %v586_v39 = vrot.slane %v579_v37, %v585_v34 }
  0xa1   : > { %884 = vrot.lane.b32.xlu1 %v2993_v3, %s2740_s28  ;;  %v588_v45 = vmul.f32 %v586_v39, %v2989_v1  ;;  %s2763_s28 = smov 60  }
  0xa2   : > { %v593_v40 = vpop.permute.xlu0 %592  ;;  %2598 = vset.pattern.permute.xlu0 %v2742_v41 }
  0xa3   : > { %v599_v42 = vsel %vm598_vm0, %v593_v40, %v595_v38  ;;  %v600_v43 = vsel %vm598_vm0, %v595_v38, %v593_v40  ;;  %1088 = vperm.xlu0 %2598, %v2987_v0   ;;  %v2759_v40 = vmov 26   ;;  %vm886_vm0 = vcmp.lt.s32.totalorder %v3053_v35, 91 }
  0xa4   : > { %v603_v44 = vpop.permute.xlu1 %602 }
  0xa5   : > { %v605_v46 = vmul.f32 %v603_v44, %v599_v42  ;;  %v606_v47 = vmul.f32 %v603_v44, %v600_v43  ;;  %900 = vrot.lane.b32.xlu1 %v2989_v1, %s2743_s12 }
  0xa6   : > { %v613_v49 = vpop.permute.xlu0 %612 }
  0xa7   : > { %v609_v48 = vcombine.low %v605_v46, %v606_v47  ;;  %2599 = vset.pattern.permute.xlu0 %v2744_v51 }
  0xa8   : > { %v615_v50 = vpop.permute.xlu1 %614  ;;  %1106 = vperm.xlu0 %2599, %v2987_v0  }
  0xa9   : > { %v611_v52 = vadd.f32 %v609_v48, %v588_v45  ;;  %902 = vrot.lane.b32.xlu1 %v2993_v3, %s2743_s12  ;;  %v617_v54 = vsel %vm616_vm1, %v613_v49, %v615_v50  ;;  %v618_v55 = vsel %vm616_vm1, %v615_v50, %v613_v49  ;;  %s2764_s12 = smov 59   ;;  %vm904_vm1 = vcmp.lt.s32.totalorder %v3053_v35, 80 }
  0xaa   : > { %v621_v53 = vpop.permute.xlu0 %620 }
  0xab   : > { %v623_v56 = vmul.f32 %v621_v53, %v617_v54  ;;  %v624_v57 = vmul.f32 %v621_v53, %v618_v55 }
  0xac   : > { %v631_v58 = vpop.permute.xlu1 %630  ;;  %2600 = vset.pattern.permute.xlu0 %v2746_v59 }
  0xad   : > { %918 = vrot.lane.b32.xlu1 %v2989_v1, %s2745_s13  ;;  %v627_v60 = vcombine.low %v623_v56, %v624_v57  ;;  %1124 = vperm.xlu0 %2600, %v2987_v0  }
  0xaf   : > { %v629_v61 = vadd.f32 %v627_v60, %v611_v52  ;;  %v639_v63 = vpop.permute.xlu0 %638 }
  0xb0   : > { %v633_v62 = vpop.permute.xlu1 %632 }
  0xb1   : > { %v635_v2 = vsel %vm634_vm2, %v631_v58, %v633_v62  ;;  %v636_v4 = vsel %vm634_vm2, %v633_v62, %v631_v58  ;;  %920 = vrot.lane.b32.xlu1 %v2993_v3, %s2745_s13  ;;  %2601 = vset.pattern.permute.xlu0 %v2747_v7  ;;  %s2765_s13 = smov 48   ;;  %vm922_vm2 = vcmp.lt.s32.totalorder %v3053_v35, 79 }
  0xb2   : > { %v641_v5 = vmul.f32 %v639_v63, %v635_v2  ;;  %v642_v6 = vmul.f32 %v639_v63, %v636_v4  ;;  %1142 = vperm.xlu0 %2601, %v2987_v0  }
  0xb4   : > { %v645_v8 = vcombine.low %v641_v5, %v642_v6  ;;  %v649_v9 = vpop.permute.xlu1 %648  ;;  %v657_v22 = vpop.permute.xlu0 %656 }
  0xb5   : > { %936 = vrot.lane.b32.xlu1 %v2989_v1, %s2748_s16 }
  0xb6   : > { %v3070_v10 = vadd.f32 %v645_v8, %v629_v61  ;;  %2602 = vset.pattern.permute.xlu0 %v2749_v11 }
  0xb7   : > { %1160 = vperm.xlu0 %2602, %v2987_v0  }
  0xb8   : > { %v651_v12 = vpop.permute.xlu1 %650 }
  0xb9   : > { %938 = vrot.lane.b32.xlu1 %v2993_v3, %s2748_s16  ;;  %v675_v24 = vpop.permute.xlu0 %674  ;;  %v653_v28 = vsel %vm652_vm3, %v649_v9, %v651_v12  ;;  %v654_v29 = vsel %vm652_vm3, %v651_v12, %v649_v9  ;;  %s2766_s16 = smov 47   ;;  %vm940_vm3 = vcmp.lt.s32.totalorder %v3053_v35, 78 }
  0xba   : > { %v659_v33 = vmul.f32 %v657_v22, %v653_v28  ;;  %v660_v34 = vmul.f32 %v657_v22, %v654_v29 }
  0xbb   : > { %2603 = vset.pattern.permute.xlu0 %v2750_v14 }
  0xbc   : > { %v667_v13 = vpop.permute.xlu1 %666  ;;  %1178 = vperm.xlu0 %2603, %v2987_v0   ;;  %v663_v45 = vcombine.low %v659_v33, %v660_v34 }
  0xbd   : > { %954 = vrot.lane.b32.xlu1 %v2989_v1, %s2751_s25 }
  0xbe   : > { %v693_v26 = vpop.permute.xlu0 %692  ;;  %v665_v56 = vadd.f32 %v663_v45, %v3070_v10 }
  0xc0   : > { %v669_v15 = vpop.permute.xlu1 %668  ;;  %2604 = vset.pattern.permute.xlu0 %v2752_v16 }
  0xc1   : > { %956 = vrot.lane.b32.xlu1 %v2993_v3, %s2751_s25  ;;  %1196 = vperm.xlu0 %2604, %v2987_v0   ;;  %v671_v31 = vsel %vm670_vm4, %v667_v13, %v669_v15  ;;  %v672_v32 = vsel %vm670_vm4, %v669_v15, %v667_v13  ;;  %s2767_s25 = smov 46   ;;  %vm958_vm4 = vcmp.lt.s32.totalorder %v3053_v35, 77 }
  0xc2   : > { %v677_v41 = vmul.f32 %v675_v24, %v671_v31  ;;  %v678_v42 = vmul.f32 %v675_v24, %v672_v32 }
  0xc3   : > { %v711_v30 = vpop.permute.xlu0 %710 }
  0xc4   : > { %v685_v17 = vpop.permute.xlu1 %684  ;;  %v681_v52 = vcombine.low %v677_v41, %v678_v42 }
  0xc5   : > { %972 = vrot.lane.b32.xlu1 %v2989_v1, %s2753_s19  ;;  %2605 = vset.pattern.permute.xlu0 %v2754_v18 }
  0xc6   : > { %1214 = vperm.xlu0 %2605, %v2987_v0   ;;  %v683_v2 = vadd.f32 %v681_v52, %v665_v56 }
  0xc8   : > { %v687_v19 = vpop.permute.xlu1 %686  ;;  %v729_v39 = vpop.permute.xlu0 %728 }
  0xc9   : > { %974 = vrot.lane.b32.xlu1 %v2993_v3, %s2753_s19  ;;  %v689_v37 = vsel %vm688_vm5, %v685_v17, %v687_v19  ;;  %v690_v38 = vsel %vm688_vm5, %v687_v19, %v685_v17  ;;  %s2768_s19 = smov 45   ;;  %vm976_vm5 = vcmp.lt.s32.totalorder %v3053_v35, 76 }
  0xca   : > { %1188 = vrot.lane.b32.xlu0 %v2989_v1, %s2755_s18  ;;  %v695_v46 = vmul.f32 %v693_v26, %v689_v37  ;;  %v696_v47 = vmul.f32 %v693_v26, %v690_v38 }
  0xcc   : > { %v703_v20 = vpop.permute.xlu1 %702  ;;  %v699_v57 = vcombine.low %v695_v46, %v696_v47 }
  0xcd   : > { %990 = vrot.lane.b32.xlu1 %v2989_v1, %s2756_s27  ;;  %v747_v51 = vpop.permute.xlu0 %746 }
  0xce   : > { %1206 = vrot.lane.b32.xlu0 %v2989_v1, %s2757_s30  ;;  %v701_v7 = vadd.f32 %v699_v57, %v683_v2 }
  0xd0   : > { %v705_v21 = vpop.permute.xlu1 %704 }
  0xd1   : > { %992 = vrot.lane.b32.xlu1 %v2993_v3, %s2756_s27  ;;  %v707_v43 = vsel %vm706_vm6, %v703_v20, %v705_v21  ;;  %v708_v44 = vsel %vm706_vm6, %v705_v21, %v703_v20  ;;  %vm994_vm6 = vcmp.lt.s32.totalorder %v3053_v35, 75 }
  0xd2   : > { %v713_v53 = vmul.f32 %v711_v30, %v707_v43  ;;  %v714_v54 = vmul.f32 %v711_v30, %v708_v44  ;;  %v765_v61 = vpop.permute.xlu0 %764 }
  0xd4   : > { %v721_v23 = vpop.permute.xlu1 %720  ;;  %v717_v4 = vcombine.low %v713_v53, %v714_v54 }
  0xd5   : > { %1008 = vrot.lane.b32.xlu1 %v2989_v1, %s2758_s22 }
  0xd6   : > { %v719_v13 = vadd.f32 %v717_v4, %v701_v7 }
  0xd7   : > { %v783_v14 = vpop.permute.xlu0 %782 }
  0xd8   : > { %v723_v25 = vpop.permute.xlu1 %722 }
  0xd9   : > { %1010 = vrot.lane.b32.xlu1 %v2993_v3, %s2758_s22  ;;  %v725_v49 = vsel %vm724_vm7, %v721_v23, %v723_v25  ;;  %v726_v50 = vsel %vm724_vm7, %v723_v25, %v721_v23  ;;  %vm1012_vm7 = vcmp.lt.s32.totalorder %v3053_v35, 64 }
  0xda   : > { %v731_v58 = vmul.f32 %v729_v39, %v725_v49  ;;  %v732_v59 = vmul.f32 %v729_v39, %v726_v50 }
  0xdc   : > { %v739_v27 = vpop.permute.xlu1 %738  ;;  %v735_v8 = vcombine.low %v731_v58, %v732_v59 }
  0xdd   : > { %1034 = vperm.xlu1 %2595, %v2987_v0  }
  0xde   : > { %v737_v15 = vadd.f32 %v735_v8, %v719_v13 }
  0xe0   : > { %v741_v36 = vpop.permute.xlu1 %740 }
  0xe1   : > { %2596 = vset.pattern.permute.xlu1 %v2759_v40  ;;  %v744_v55 = vsel %vm742_vm8, %v741_v36, %v739_v27 }
  0xe2   : > { %1052 = vperm.xlu1 %2596, %v2987_v0   ;;  %v743_v0 = vsel %vm742_vm8, %v739_v27, %v741_v36  ;;  %v750_v6 = vmul.f32 %v747_v51, %v744_v55  ;;  %v801_v27 = vpop.permute.xlu0 %800  ;;  %vm1030_vm8 = vcmp.lt.s32.totalorder %v3053_v35, 63 }
  0xe3   : > { %v749_v5 = vmul.f32 %v747_v51, %v743_v0 }
  0xe4   : > { %v757_v48 = vpop.permute.xlu1 %756 }
  0xe5   : > { %v753_v10 = vcombine.low %v749_v5, %v750_v6 }
  0xe6   : > { %1026 = vrot.lane.b32.xlu1 %v2989_v1, %s2760_s1  ;;  %v819_v37 = vpop.permute.xlu0 %818 }
  0xe7   : > { %v755_v20 = vadd.f32 %v753_v10, %v737_v15 }
  0xe8   : > { %v759_v60 = vpop.permute.xlu1 %758 }
  0xe9   : > { %v761_v62 = vsel %vm760_vm9, %v757_v48, %v759_v60  ;;  %v762_v63 = vsel %vm760_vm9, %v759_v60, %v757_v48  ;;  %vm1048_vm9 = vcmp.lt.s32.totalorder %v3053_v35, 62 }
  0xea   : > { %1028 = vrot.lane.b32.xlu1 %v2993_v3, %s2760_s1  ;;  %v767_v9 = vmul.f32 %v765_v61, %v761_v62  ;;  %v768_v11 = vmul.f32 %v765_v61, %v762_v63  ;;  %v837_v46 = vpop.permute.xlu0 %836 }
  0xec   : > { %v775_v12 = vpop.permute.xlu1 %774  ;;  %v771_v16 = vcombine.low %v767_v9, %v768_v11 }
  0xee   : > { %1044 = vrot.lane.b32.xlu1 %v2989_v1, %s2761_s2  ;;  %v773_v23 = vadd.f32 %v771_v16, %v755_v20  ;;  %v855_v0 = vpop.permute.xlu0 %854 }
  0xf0   : > { %v777_v17 = vpop.permute.xlu1 %776 }
  0xf1   : > { %v779_v18 = vsel %vm778_vm10, %v775_v12, %v777_v17  ;;  %v780_v19 = vsel %vm778_vm10, %v777_v17, %v775_v12  ;;  %vm1066_vm10 = vcmp.lt.s32.totalorder %v3053_v35, 61 }
  0xf2   : > { %v785_v21 = vmul.f32 %v783_v14, %v779_v18  ;;  %v786_v22 = vmul.f32 %v783_v14, %v780_v19  ;;  %1046 = vrot.lane.b32.xlu1 %v2993_v3, %s2761_s2  ;;  %v873_v63 = vpop.permute.xlu0 %872 }
  0xf4   : > { %v789_v24 = vcombine.low %v785_v21, %v786_v22  ;;  %v793_v25 = vpop.permute.xlu1 %792 }
  0xf6   : > { %v791_v26 = vadd.f32 %v789_v24, %v773_v23  ;;  %1062 = vrot.lane.b32.xlu1 %v2989_v1, %s2762_s4  ;;  %v891_v12 = vpop.permute.xlu0 %890 }
  0xf8   : > { %v795_v28 = vpop.permute.xlu1 %794 }
  0xf9   : > { %v797_v29 = vsel %vm796_vm11, %v793_v25, %v795_v28  ;;  %v798_v30 = vsel %vm796_vm11, %v795_v28, %v793_v25  ;;  %vm1084_vm11 = vcmp.lt.s32.totalorder %v3053_v35, 60 }
  0xfa   : > { %v803_v31 = vmul.f32 %v801_v27, %v797_v29  ;;  %v804_v32 = vmul.f32 %v801_v27, %v798_v30  ;;  %1064 = vrot.lane.b32.xlu1 %v2993_v3, %s2762_s4  ;;  %v909_v20 = vpop.permute.xlu0 %908 }
  0xfc   : > { %v807_v33 = vcombine.low %v803_v31, %v804_v32  ;;  %v811_v34 = vpop.permute.xlu1 %810 }
  0xfe   : > { %v809_v36 = vadd.f32 %v807_v33, %v791_v26  ;;  %1080 = vrot.lane.b32.xlu1 %v2989_v1, %s2763_s28 }
  0xff   : > { %v927_v29 = vpop.permute.xlu0 %926 }
 0x100   : > { %v813_v38 = vpop.permute.xlu1 %812 }
 0x101   : > { %v815_v39 = vsel %vm814_vm12, %v811_v34, %v813_v38  ;;  %v816_v40 = vsel %vm814_vm12, %v813_v38, %v811_v34  ;;  %vm1102_vm12 = vcmp.lt.s32.totalorder %v3053_v35, 59 }
 0x102   : > { %v821_v41 = vmul.f32 %v819_v37, %v815_v39  ;;  %v822_v42 = vmul.f32 %v819_v37, %v816_v40  ;;  %1082 = vrot.lane.b32.xlu1 %v2993_v3, %s2763_s28 }
 0x104   : > { %v825_v43 = vcombine.low %v821_v41, %v822_v42  ;;  %v829_v44 = vpop.permute.xlu1 %828  ;;  %v945_v38 = vpop.permute.xlu0 %944 }
 0x106   : > { %v827_v45 = vadd.f32 %v825_v43, %v809_v36  ;;  %1098 = vrot.lane.b32.xlu1 %v2989_v1, %s2764_s12 }
 0x108   : > { %v831_v47 = vpop.permute.xlu1 %830 }
 0x109   : > { %v833_v48 = vsel %vm832_vm13, %v829_v44, %v831_v47  ;;  %v834_v49 = vsel %vm832_vm13, %v831_v47, %v829_v44  ;;  %v963_v47 = vpop.permute.xlu0 %962  ;;  %vm1120_vm13 = vcmp.lt.s32.totalorder %v3053_v35, 48 }
 0x10a   : > { %v839_v50 = vmul.f32 %v837_v46, %v833_v48  ;;  %v840_v51 = vmul.f32 %v837_v46, %v834_v49  ;;  %1100 = vrot.lane.b32.xlu1 %v2993_v3, %s2764_s12 }
 0x10c   : > { %v843_v52 = vcombine.low %v839_v50, %v840_v51  ;;  %v847_v53 = vpop.permute.xlu1 %846 }
 0x10e   : > { %v845_v54 = vadd.f32 %v843_v52, %v827_v45  ;;  %1116 = vrot.lane.b32.xlu1 %v2989_v1, %s2765_s13 }
 0x110   : > { %v849_v55 = vpop.permute.xlu1 %848 }
 0x111   : > { %v851_v56 = vsel %vm850_vm14, %v847_v53, %v849_v55  ;;  %v852_v57 = vsel %vm850_vm14, %v849_v55, %v847_v53  ;;  %vm1138_vm14 = vcmp.lt.s32.totalorder %v3053_v35, 47 }
 0x112   : > { %v857_v58 = vmul.f32 %v855_v0, %v851_v56  ;;  %v858_v59 = vmul.f32 %v855_v0, %v852_v57  ;;  %1118 = vrot.lane.b32.xlu1 %v2993_v3, %s2765_s13  ;;  %v981_v0 = vpop.permute.xlu0 %980 }
 0x114   : > { %v861_v60 = vcombine.low %v857_v58, %v858_v59  ;;  %v865_v61 = vpop.permute.xlu1 %864 }
 0x116   : > { %v863_v62 = vadd.f32 %v861_v60, %v845_v54  ;;  %1134 = vrot.lane.b32.xlu1 %v2989_v1, %s2766_s16 }
 0x118   : > { %v867_v2 = vpop.permute.xlu1 %866 }
 0x119   : > { %v869_v4 = vsel %vm868_vm15, %v865_v61, %v867_v2  ;;  %v870_v5 = vsel %vm868_vm15, %v867_v2, %v865_v61  ;;  %vm1156_vm15 = vcmp.lt.s32.totalorder %v3053_v35, 46 }
 0x11a   : > { %v875_v6 = vmul.f32 %v873_v63, %v869_v4  ;;  %v876_v7 = vmul.f32 %v873_v63, %v870_v5  ;;  %1136 = vrot.lane.b32.xlu1 %v2993_v3, %s2766_s16  ;;  %v999_v63 = vpop.permute.xlu0 %998 }
 0x11c   : > { %v879_v8 = vcombine.low %v875_v6, %v876_v7  ;;  %v883_v9 = vpop.permute.xlu1 %882 }
 0x11e   : > { %v881_v11 = vadd.f32 %v879_v8, %v863_v62  ;;  %1152 = vrot.lane.b32.xlu1 %v2989_v1, %s2767_s25 }
 0x120   : > { %v885_v13 = vpop.permute.xlu1 %884 }
 0x121   : > { %v887_v10 = vsel %vm886_vm0, %v883_v9, %v885_v13  ;;  %v888_v14 = vsel %vm886_vm0, %v885_v13, %v883_v9  ;;  %vm1174_vm0 = vcmp.lt.s32.totalorder %v3053_v35, 45 }
 0x122   : > { %v893_v15 = vmul.f32 %v891_v12, %v887_v10  ;;  %v894_v16 = vmul.f32 %v891_v12, %v888_v14  ;;  %1154 = vrot.lane.b32.xlu1 %v2993_v3, %s2767_s25  ;;  %v1017_v12 = vpop.permute.xlu0 %1016 }
 0x124   : > { %v897_v17 = vcombine.low %v893_v15, %v894_v16  ;;  %v901_v18 = vpop.permute.xlu1 %900 }
 0x126   : > { %v899_v19 = vadd.f32 %v897_v17, %v881_v11  ;;  %1170 = vrot.lane.b32.xlu1 %v2989_v1, %s2768_s19 }
 0x128   : > { %v903_v21 = vpop.permute.xlu1 %902 }
 0x129   : > { %v905_v22 = vsel %vm904_vm1, %v901_v18, %v903_v21  ;;  %v906_v23 = vsel %vm904_vm1, %v903_v21, %v901_v18  ;;  %vm1192_vm1 = vcmp.lt.s32.totalorder %v3053_v35, 44 }
 0x12a   : > { %v911_v24 = vmul.f32 %v909_v20, %v905_v22  ;;  %v912_v25 = vmul.f32 %v909_v20, %v906_v23  ;;  %1172 = vrot.lane.b32.xlu1 %v2993_v3, %s2768_s19 }
 0x12c   : > { %v915_v26 = vcombine.low %v911_v24, %v912_v25  ;;  %v919_v27 = vpop.permute.xlu1 %918 }
 0x12e   : > { %v917_v28 = vadd.f32 %v915_v26, %v899_v19  ;;  %1190 = vrot.lane.b32.xlu1 %v2993_v3, %s2755_s18 }
 0x130   : > { %v921_v30 = vpop.permute.xlu1 %920 }
 0x131   : > { %v923_v31 = vsel %vm922_vm2, %v919_v27, %v921_v30  ;;  %v924_v1 = vsel %vm922_vm2, %v921_v30, %v919_v27  ;;  %vm1210_vm2 = vcmp.lt.s32.totalorder %v3053_v35, 43 }
 0x132   : > { %v929_v32 = vmul.f32 %v927_v29, %v923_v31  ;;  %v930_v33 = vmul.f32 %v927_v29, %v924_v1  ;;  %1208 = vrot.lane.b32.xlu1 %v2993_v3, %s2757_s30 }
 0x134   : > { %v933_v34 = vcombine.low %v929_v32, %v930_v33  ;;  %v937_v36 = vpop.permute.xlu1 %936  ;;  %v1071_v32 = vpop.permute.xlu0 %1070 }
 0x136   : > { %v935_v37 = vadd.f32 %v933_v34, %v917_v28 }
 0x138   : > { %v939_v39 = vpop.permute.xlu1 %938  ;;  %v1089_v34 = vpop.permute.xlu0 %1088 }
 0x139   : > { %v941_v40 = vsel %vm940_vm3, %v937_v36, %v939_v39  ;;  %v942_v41 = vsel %vm940_vm3, %v939_v39, %v937_v36 }
 0x13a   : > { %v947_v42 = vmul.f32 %v945_v38, %v941_v40  ;;  %v948_v43 = vmul.f32 %v945_v38, %v942_v41 }
 0x13c   : > { %v951_v44 = vcombine.low %v947_v42, %v948_v43  ;;  %v955_v45 = vpop.permute.xlu1 %954 }
 0x13e   : > { %v953_v46 = vadd.f32 %v951_v44, %v935_v37  ;;  %v1107_v37 = vpop.permute.xlu0 %1106 }
 0x140   : > { %v957_v48 = vpop.permute.xlu1 %956 }
 0x141   : > { %v959_v49 = vsel %vm958_vm4, %v955_v45, %v957_v48  ;;  %v960_v3 = vsel %vm958_vm4, %v957_v48, %v955_v45 }
 0x142   : > { %v965_v50 = vmul.f32 %v963_v47, %v959_v49  ;;  %v966_v51 = vmul.f32 %v963_v47, %v960_v3  ;;  %v1125_v39 = vpop.permute.xlu0 %1124 }
 0x144   : > { %v969_v52 = vcombine.low %v965_v50, %v966_v51  ;;  %v973_v53 = vpop.permute.xlu1 %972 }
 0x146   : > { %v971_v54 = vadd.f32 %v969_v52, %v953_v46  ;;  %v1143_v41 = vpop.permute.xlu0 %1142 }
 0x148   : > { %v975_v55 = vpop.permute.xlu1 %974 }
 0x149   : > { %v977_v56 = vsel %vm976_vm5, %v973_v53, %v975_v55  ;;  %v978_v57 = vsel %vm976_vm5, %v975_v55, %v973_v53 }
 0x14a   : > { %v983_v58 = vmul.f32 %v981_v0, %v977_v56  ;;  %v984_v59 = vmul.f32 %v981_v0, %v978_v57  ;;  %v1161_v44 = vpop.permute.xlu0 %1160 }
 0x14c   : > { %v987_v60 = vcombine.low %v983_v58, %v984_v59  ;;  %v991_v61 = vpop.permute.xlu1 %990 }
 0x14e   : > { %v989_v62 = vadd.f32 %v987_v60, %v971_v54  ;;  %v1179_v46 = vpop.permute.xlu0 %1178 }
 0x150   : > { %v993_v2 = vpop.permute.xlu1 %992 }
 0x151   : > { %v995_v4 = vsel %vm994_vm6, %v991_v61, %v993_v2  ;;  %v996_v5 = vsel %vm994_vm6, %v993_v2, %v991_v61 }
 0x152   : > { %v1001_v6 = vmul.f32 %v999_v63, %v995_v4  ;;  %v1002_v7 = vmul.f32 %v999_v63, %v996_v5  ;;  %v1197_v54 = vpop.permute.xlu0 %1196 }
 0x154   : > { %v1005_v8 = vcombine.low %v1001_v6, %v1002_v7  ;;  %v1009_v9 = vpop.permute.xlu1 %1008 }
 0x156   : > { %v1007_v11 = vadd.f32 %v1005_v8, %v989_v62  ;;  %v1215_v8 = vpop.permute.xlu0 %1214 }
 0x158   : > { %v1011_v13 = vpop.permute.xlu1 %1010 }
 0x159   : > { %v1013_v10 = vsel %vm1012_vm7, %v1009_v9, %v1011_v13  ;;  %v1014_v14 = vsel %vm1012_vm7, %v1011_v13, %v1009_v9 }
 0x15a   : > { %v1019_v15 = vmul.f32 %v1017_v12, %v1013_v10  ;;  %v1020_v16 = vmul.f32 %v1017_v12, %v1014_v14 }
 0x15c   : > { %v1023_v17 = vcombine.low %v1019_v15, %v1020_v16  ;;  %v1035_v18 = vpop.permute.xlu1 %1034 }
 0x15e   : > { %v1025_v19 = vadd.f32 %v1023_v17, %v1007_v11 }
 0x161   : > { %v1053_v20 = vpop.permute.xlu1 %1052 }
 0x165   : > { %v1027_v21 = vpop.permute.xlu1 %1026 }
 0x169   : > { %v1029_v22 = vpop.permute.xlu1 %1028 }
 0x16a   : > { %v1031_v23 = vsel %vm1030_vm8, %v1027_v21, %v1029_v22  ;;  %v1032_v24 = vsel %vm1030_vm8, %v1029_v22, %v1027_v21 }
 0x16b   : > { %v1037_v25 = vmul.f32 %v1035_v18, %v1031_v23  ;;  %v1038_v26 = vmul.f32 %v1035_v18, %v1032_v24 }
 0x16d   : > { %v1041_v27 = vcombine.low %v1037_v25, %v1038_v26  ;;  %v1045_v28 = vpop.permute.xlu1 %1044 }
 0x16f   : > { %v1043_v29 = vadd.f32 %v1041_v27, %v1025_v19  ;;  %v1189_v27 = vpop.permute.xlu0 %1188 }
 0x171   : > { %v1047_v30 = vpop.permute.xlu1 %1046 }
 0x172   : > { %v1049_v48 = vsel %vm1048_vm9, %v1045_v28, %v1047_v30  ;;  %v1050_v49 = vsel %vm1048_vm9, %v1047_v30, %v1045_v28 }
 0x173   : > { %v1055_v51 = vmul.f32 %v1053_v20, %v1049_v48  ;;  %v1056_v52 = vmul.f32 %v1053_v20, %v1050_v49 }
 0x175   : > { %v1063_v31 = vpop.permute.xlu1 %1062  ;;  %v1059_v60 = vcombine.low %v1055_v51, %v1056_v52 }
 0x177   : > { %v1061_v12 = vadd.f32 %v1059_v60, %v1043_v29 }
 0x179   : > { %v1065_v1 = vpop.permute.xlu1 %1064 }
 0x17a   : > { %v1067_v3 = vsel %vm1066_vm10, %v1063_v31, %v1065_v1  ;;  %v1068_v50 = vsel %vm1066_vm10, %v1065_v1, %v1063_v31 }
 0x17b   : > { %v1073_v56 = vmul.f32 %v1071_v32, %v1067_v3  ;;  %v1074_v57 = vmul.f32 %v1071_v32, %v1068_v50 }
 0x17d   : > { %v1081_v33 = vpop.permute.xlu1 %1080  ;;  %v1077_v5 = vcombine.low %v1073_v56, %v1074_v57 }
 0x17f   : > { %v1079_v18 = vadd.f32 %v1077_v5, %v1061_v12 }
 0x181   : > { %v1083_v36 = vpop.permute.xlu1 %1082 }
 0x182   : > { %v1085_v0 = vsel %vm1084_vm11, %v1081_v33, %v1083_v36  ;;  %v1086_v55 = vsel %vm1084_vm11, %v1083_v36, %v1081_v33 }
 0x183   : > { %v1091_v61 = vmul.f32 %v1089_v34, %v1085_v0  ;;  %v1092_v62 = vmul.f32 %v1089_v34, %v1086_v55 }
 0x185   : > { %v1099_v38 = vpop.permute.xlu1 %1098  ;;  %v1095_v13 = vcombine.low %v1091_v61, %v1092_v62 }
 0x187   : > { %v1097_v22 = vadd.f32 %v1095_v13, %v1079_v18 }
 0x189   : > { %v1101_v40 = vpop.permute.xlu1 %1100 }
 0x18a   : > { %v1103_v58 = vsel %vm1102_vm12, %v1099_v38, %v1101_v40  ;;  %v1104_v59 = vsel %vm1102_vm12, %v1101_v40, %v1099_v38 }
 0x18b   : > { %v1109_v6 = vmul.f32 %v1107_v37, %v1103_v58  ;;  %v1110_v7 = vmul.f32 %v1107_v37, %v1104_v59 }
 0x18d   : > { %v1117_v42 = vpop.permute.xlu1 %1116  ;;  %v1113_v19 = vcombine.low %v1109_v6, %v1110_v7 }
 0x18f   : > { %v1115_v30 = vadd.f32 %v1113_v19, %v1097_v22 }
 0x191   : > { %v1119_v43 = vpop.permute.xlu1 %1118 }
 0x192   : > { %v1121_v2 = vsel %vm1120_vm13, %v1117_v42, %v1119_v43  ;;  %v1122_v4 = vsel %vm1120_vm13, %v1119_v43, %v1117_v42  ;;  %v1207_v43 = vpop.permute.xlu0 %1206 }
 0x193   : > { %v1127_v10 = vmul.f32 %v1125_v39, %v1121_v2  ;;  %v1128_v14 = vmul.f32 %v1125_v39, %v1122_v4 }
 0x195   : > { %v1135_v45 = vpop.permute.xlu1 %1134  ;;  %v1131_v23 = vcombine.low %v1127_v10, %v1128_v14 }
 0x197   : > { %v1133_v33 = vadd.f32 %v1131_v23, %v1115_v30 }
 0x199   : > { %v1137_v47 = vpop.permute.xlu1 %1136 }
 0x19a   : > { %v1139_v9 = vsel %vm1138_vm14, %v1135_v45, %v1137_v47  ;;  %v1140_v11 = vsel %vm1138_vm14, %v1137_v47, %v1135_v45 }
 0x19b   : > { %v1145_v20 = vmul.f32 %v1143_v41, %v1139_v9  ;;  %v1146_v21 = vmul.f32 %v1143_v41, %v1140_v11 }
 0x19d   : > { %v1153_v53 = vpop.permute.xlu1 %1152  ;;  %v1149_v31 = vcombine.low %v1145_v20, %v1146_v21 }
 0x19f   : > { %v1151_v39 = vadd.f32 %v1149_v31, %v1133_v33 }
 0x1a1   : > { %v1155_v63 = vpop.permute.xlu1 %1154 }
 0x1a2   : > { %v1157_v16 = vsel %vm1156_vm15, %v1153_v53, %v1155_v63  ;;  %v1158_v17 = vsel %vm1156_vm15, %v1155_v63, %v1153_v53 }
 0x1a3   : > { %v1163_v24 = vmul.f32 %v1161_v44, %v1157_v16  ;;  %v1164_v25 = vmul.f32 %v1161_v44, %v1158_v17 }
 0x1a5   : > { %v1171_v15 = vpop.permute.xlu1 %1170  ;;  %v1167_v34 = vcombine.low %v1163_v24, %v1164_v25 }
 0x1a7   : > { %v1169_v44 = vadd.f32 %v1167_v34, %v1151_v39 }
 0x1a9   : > { %v1173_v26 = vpop.permute.xlu1 %1172 }
 0x1aa   : > { %v1175_v28 = vsel %vm1174_vm0, %v1171_v15, %v1173_v26  ;;  %v1176_v29 = vsel %vm1174_vm0, %v1173_v26, %v1171_v15 }
 0x1ab   : > { %v1181_v1 = vmul.f32 %v1179_v46, %v1175_v28  ;;  %v1182_v32 = vmul.f32 %v1179_v46, %v1176_v29 }
 0x1ad   : > { %v1191_v36 = vpop.permute.xlu1 %1190  ;;  %v1185_v40 = vcombine.low %v1181_v1, %v1182_v32 }
 0x1ae   : > { %v1193_v37 = vsel %vm1192_vm1, %v1189_v27, %v1191_v36  ;;  %v1194_v38 = vsel %vm1192_vm1, %v1191_v36, %v1189_v27 }
 0x1af   : > { %v1199_v41 = vmul.f32 %v1197_v54, %v1193_v37  ;;  %v1200_v42 = vmul.f32 %v1197_v54, %v1194_v38  ;;  %v1187_v3 = vadd.f32 %v1185_v40, %v1169_v44 }
 0x1b1   : > { %v1203_v45 = vcombine.low %v1199_v41, %v1200_v42  ;;  %v1209_v47 = vpop.permute.xlu1 %1208 }
 0x1b2   : > { %v1211_v48 = vsel %vm1210_vm2, %v1207_v43, %v1209_v47  ;;  %v1212_v49 = vsel %vm1210_vm2, %v1209_v47, %v1207_v43 }
 0x1b3   : > { %v1217_v46 = vmul.f32 %v1215_v8, %v1211_v48  ;;  %v1218_v50 = vmul.f32 %v1215_v8, %v1212_v49  ;;  %v1205_v51 = vadd.f32 %v1203_v45, %v1187_v3 }
 0x1b5   : > { %v1221_v52 = vcombine.low %v1217_v46, %v1218_v50 }
 0x1b7   : > { %v1223_v53 = vadd.f32 %v1221_v52, %v1205_v51 }
 0x1b9   : > { %1224 = vst [vmem:[%s554_s21] sm:$0xff] %v1223_v53 }
 0x1ba PF: > { %s3446_s30 = sld [smem:[#allocation2_spill]] }
 0x1c0   : > { %p2375_p7 = scmp.ne.s32.totalorder %s3446_s30, 1 }
 0x1c1   : > { %s3447_s2 = scalar_lea.vmem (!%p2375_p7), %s3419_s3, %s2929_s24  ;;  %v2769_v54 = vmov (!%p2375_p7), 3   ;;  %v2770_v0 = vmov (!%p2375_p7), 1   ;;  %v3158_v55 = vld [vmem:[%s2945_s20] sm:$0xff] (!%p2375_p7)  ;;  %v2771_v56 = vmov (!%p2375_p7), 2   ;;  %s2772_s21 = smov (!%p2375_p7), 16   ;;  %v2773_v57 = vmov (!%p2375_p7), 4  }
 0x1c2   : > { %1228 = sbr.rel (%p2375_p7) target bundleno = 761 (0x2f9), region = 60  ;;  %v1231_v35 = vld [vmem:[%s3447_s2] sm:$0xff] (!%p2375_p7)  ;;  %2609 = vset.pattern.permute.xlu1 (!%p2375_p7), %v2769_v54  ;;  %2607 = vset.pattern.permute.xlu0 (!%p2375_p7), %v2770_v0  ;;  %v2774_v58 = vmov (!%p2375_p7), 5   ;;  %v2775_v59 = vmov (!%p2375_p7), 6   ;;  %v2776_v60 = vmov (!%p2375_p7), 8   ;;  %v2777_v61 = vmov (!%p2375_p7), 7  }
 0x1c3   : > { %1280 = vperm.xlu1 (!%p2375_p7), %2609, %v1231_v35   ;;  %1244 = vperm.xlu0 (!%p2375_p7), %2607, %v1231_v35   ;;  %v2778_v62 = vmov (!%p2375_p7), 11   ;;  %v2779_v63 = vmov (!%p2375_p7), 9   ;;  %v2780_v2 = vmov (!%p2375_p7), 14   ;;  %v2781_v4 = vmov (!%p2375_p7), 10   ;;  %v3163_v13 = vld [vmem:[%s2945_s20 + $0x8] sm:$0xff] (!%p2375_p7)  ;;  %s2786_s24 = smov (!%p2375_p7), 127  }
 0x1c4   : > { %v2782_v5 = vmov (!%p2375_p7), 15   ;;  %v2783_v6 = vmov (!%p2375_p7), 12   ;;  %v2784_v7 = vmov (!%p2375_p7), 13   ;;  %v2785_v8 = vmov (!%p2375_p7), 0   ;;  %s2787_s4 = smov (!%p2375_p7), 126   ;;  %s2788_s20 = smov (!%p2375_p7), 125  }
 0x1c5   : > { %vm1239_vm3 = vcmask (!%p2375_p7), 1047680   ;;  %s2789_s28 = smov (!%p2375_p7), 116   ;;  %s2790_s12 = smov (!%p2375_p7), 115   ;;  %vm1255_vm4 = vcmask (!%p2375_p7), 1039360   ;;  %vm1273_vm5 = vcmask (!%p2375_p7), 1031168   ;;  %vm1291_vm6 = vcmask (!%p2375_p7), 1022976  }
 0x1c6   : > { %s2791_s13 = smov (!%p2375_p7), 114   ;;  %s2792_s16 = smov (!%p2375_p7), 113   ;;  %vm1309_vm7 = vcmask (!%p2375_p7), 949248   ;;  %vm1327_vm8 = vcmask (!%p2375_p7), 941056   ;;  %vm1345_vm9 = vcmask (!%p2375_p7), 932864   ;;  %vm1363_vm10 = vcmask (!%p2375_p7), 924672  }
 0x1c7   : > { %2608 = vset.pattern.permute.xlu0 (!%p2375_p7), %v2771_v56  ;;  %1240 = vrot.lane.b32.xlu1 (!%p2375_p7), %v3158_v55, %s2772_s21  ;;  %s2793_s25 = smov (!%p2375_p7), 104   ;;  %s2794_s19 = smov (!%p2375_p7), 103   ;;  %vm1381_vm11 = vcmask (!%p2375_p7), 850944   ;;  %vm1399_vm12 = vcmask (!%p2375_p7), 842752   ;;  %vm1417_vm13 = vcmask (!%p2375_p7), 834560   ;;  %vm1435_vm14 = vcmask (!%p2375_p7), 826368  }
 0x1c8   : > { %1262 = vperm.xlu0 (!%p2375_p7), %2608, %v1231_v35   ;;  %2610 = vset.pattern.permute.xlu1 (!%p2375_p7), %v2773_v57  ;;  %s2795_s18 = smov (!%p2375_p7), 102   ;;  %s2796_s27 = smov (!%p2375_p7), 101   ;;  %vm1453_vm15 = vcmask (!%p2375_p7), 752640   ;;  %vm1471_vm0 = vcmask (!%p2375_p7), 744448   ;;  %vm1489_vm1 = vcmask (!%p2375_p7), 736256   ;;  %vm1507_vm2 = vcmask (!%p2375_p7), 728064  }
 0x1c9   : > { %s2797_s30 = smov 92   ;;  %s2798_s22 = smov 91  }
 0x1ca   : > { %s2799_s1 = smov 90   ;;  %s2800_s2 = smov 89  }
 0x1cb   : > { %1298 = vperm.xlu1 %2610, %v1231_v35  }
 0x1cc   : > { %2611 = vset.pattern.permute.xlu0 %v2774_v58 }
 0x1cd   : > { %1316 = vperm.xlu0 %2611, %v1231_v35  }
 0x1cf   : > { %2612 = vset.pattern.permute.xlu1 %v2775_v59 }
 0x1d0   : > { %1334 = vperm.xlu1 %2612, %v1231_v35  }
 0x1d1   : > { %2614 = vset.pattern.permute.xlu0 %v2776_v60 }
 0x1d2   : > { %1370 = vperm.xlu0 %2614, %v1231_v35  }
 0x1d4   : > { %2613 = vset.pattern.permute.xlu1 %v2777_v61 }
 0x1d5   : > { %1352 = vperm.xlu1 %2613, %v1231_v35  }
 0x1d6   : > { %2617 = vset.pattern.permute.xlu0 %v2778_v62 }
 0x1d7   : > { %1424 = vperm.xlu0 %2617, %v1231_v35  }
 0x1d9   : > { %2615 = vset.pattern.permute.xlu1 %v2779_v63 }
 0x1da   : > { %1388 = vperm.xlu1 %2615, %v1231_v35  }
 0x1db   : > { %2620 = vset.pattern.permute.xlu0 %v2780_v2 }
 0x1dc   : > { %1478 = vperm.xlu0 %2620, %v1231_v35  }
 0x1de   : > { %2616 = vset.pattern.permute.xlu1 %v2781_v4 }
 0x1df   : > { %1406 = vperm.xlu1 %2616, %v1231_v35  }
 0x1e0   : > { %2623 = vset.pattern.permute.xlu0 %v2782_v5 }
 0x1e3   : > { %2618 = vset.pattern.permute.xlu1 %v2783_v6 }
 0x1e4   : > { %1442 = vperm.xlu1 %2618, %v1231_v35  }
 0x1e8   : > { %2619 = vset.pattern.permute.xlu1 %v2784_v7 }
 0x1e9   : > { %1460 = vperm.xlu1 %2619, %v1231_v35  }
 0x1ed   : > { %2621 = vset.pattern.permute.xlu1 %v2782_v5 }
 0x1ee   : > { %1496 = vperm.xlu1 %2621, %v1231_v35  }
 0x1f2   : > { %2622 = vset.pattern.permute.xlu1 %v2785_v8 }
 0x1f3   : > { %1234 = vperm.xlu1 %2622, %v1231_v35  }
 0x242   : > { %v1281_v9 = vpop.permute.xlu1 %1280  ;;  %v1245_v11 = vpop.permute.xlu0 %1244 }
 0x243   : > { %v1247_v12 = vmul.f32 %v1245_v11, %v3158_v55  ;;  %v1283_v18 = vmul.f32 %v1281_v9, %v3158_v55 }
 0x245   : > { %1251 = vrot.lane.b32.xlu0 %v1247_v12, %s2786_s24 }
 0x246   : > { %v1241_v10 = vpop.permute.xlu1 %1240 }
 0x247   : > { %v3166_v14 = vsel %vm1239_vm3, %v1241_v10, %v3163_v13  ;;  %v1263_v15 = vpop.permute.xlu0 %1262  ;;  %vm1514_vm3 = vcmask 130048  }
 0x248   : > { %v1265_v16 = vmul.f32 %v1263_v15, %v3158_v55  ;;  %v1248_v17 = vmul.f32 %v1245_v11, %v3166_v14  ;;  %v1266_v19 = vmul.f32 %v1263_v15, %v3166_v14  ;;  %v1284_v22 = vmul.f32 %v1281_v9, %v3166_v14 }
 0x24a   : > { %1253 = vrot.lane.b32.xlu1 %v1248_v17, %s2786_s24  ;;  %1269 = vrot.lane.b32.xlu0 %v1265_v16, %s2787_s4  ;;  %v1299_v20 = vpop.permute.xlu1 %1298 }
 0x24b   : > { %v1301_v21 = vmul.f32 %v1299_v20, %v3158_v55  ;;  %v1302_v26 = vmul.f32 %v1299_v20, %v3166_v14 }
 0x24c   : > { %v1317_v23 = vpop.permute.xlu0 %1316 }
 0x24d   : > { %v1319_v24 = vmul.f32 %v1317_v23, %v3158_v55  ;;  %v1320_v28 = vmul.f32 %v1317_v23, %v3166_v14 }
 0x24e   : > { %1271 = vrot.lane.b32.xlu1 %v1266_v19, %s2787_s4  ;;  %1287 = vrot.lane.b32.xlu0 %v1283_v18, %s2788_s20 }
 0x24f   : > { %v1335_v25 = vpop.permute.xlu1 %1334 }
 0x250   : > { %v1337_v27 = vmul.f32 %v1335_v25, %v3158_v55  ;;  %v1338_v31 = vmul.f32 %v1335_v25, %v3166_v14 }
 0x251   : > { %v1371_v1 = vpop.permute.xlu0 %1370 }
 0x252   : > { %1289 = vrot.lane.b32.xlu1 %v1284_v22, %s2788_s20  ;;  %1305 = vrot.lane.b32.xlu0 %v1301_v21, %s2789_s28  ;;  %v1373_v32 = vmul.f32 %v1371_v1, %v3158_v55  ;;  %v1374_v37 = vmul.f32 %v1371_v1, %v3166_v14 }
 0x254   : > { %v1353_v29 = vpop.permute.xlu1 %1352 }
 0x255   : > { %v1355_v30 = vmul.f32 %v1353_v29, %v3158_v55  ;;  %v1356_v34 = vmul.f32 %v1353_v29, %v3166_v14 }
 0x256   : > { %1307 = vrot.lane.b32.xlu1 %v1302_v26, %s2789_s28  ;;  %1323 = vrot.lane.b32.xlu0 %v1319_v24, %s2790_s12  ;;  %v1425_v41 = vpop.permute.xlu0 %1424 }
 0x257   : > { %v1427_v42 = vmul.f32 %v1425_v41, %v3158_v55  ;;  %v1428_v47 = vmul.f32 %v1425_v41, %v3166_v14 }
 0x259   : > { %v1389_v33 = vpop.permute.xlu1 %1388 }
 0x25a   : > { %1325 = vrot.lane.b32.xlu1 %v1320_v28, %s2790_s12  ;;  %1341 = vrot.lane.b32.xlu0 %v1337_v27, %s2791_s13  ;;  %v1391_v36 = vmul.f32 %v1389_v33, %v3158_v55  ;;  %v1392_v40 = vmul.f32 %v1389_v33, %v3166_v14 }
 0x25b   : > { %v1479_v46 = vpop.permute.xlu0 %1478 }
 0x25c   : > { %v1481_v50 = vmul.f32 %v1479_v46, %v3158_v55  ;;  %v1482_v35 = vmul.f32 %v1479_v46, %v3166_v14 }
 0x25e   : > { %1343 = vrot.lane.b32.xlu1 %v1338_v31, %s2791_s13  ;;  %1359 = vrot.lane.b32.xlu0 %v1355_v30, %s2792_s16  ;;  %v1407_v38 = vpop.permute.xlu1 %1406 }
 0x25f   : > { %v1409_v39 = vmul.f32 %v1407_v38, %v3158_v55  ;;  %v1410_v44 = vmul.f32 %v1407_v38, %v3166_v14 }
 0x262   : > { %1361 = vrot.lane.b32.xlu1 %v1356_v34, %s2792_s16  ;;  %1377 = vrot.lane.b32.xlu0 %v1373_v32, %s2793_s25 }
 0x263   : > { %v1443_v43 = vpop.permute.xlu1 %1442 }
 0x264   : > { %v1445_v45 = vmul.f32 %v1443_v43, %v3158_v55  ;;  %v1446_v3 = vmul.f32 %v1443_v43, %v3166_v14 }
 0x266   : > { %1379 = vrot.lane.b32.xlu1 %v1374_v37, %s2793_s25  ;;  %1395 = vrot.lane.b32.xlu0 %v1391_v36, %s2794_s19 }
 0x268   : > { %v1461_v48 = vpop.permute.xlu1 %1460 }
 0x269   : > { %v1463_v49 = vmul.f32 %v1461_v48, %v3158_v55  ;;  %v1464_v51 = vmul.f32 %v1461_v48, %v3166_v14 }
 0x26a   : > { %1397 = vrot.lane.b32.xlu1 %v1392_v40, %s2794_s19  ;;  %1413 = vrot.lane.b32.xlu0 %v1409_v39, %s2795_s18 }
 0x26d   : > { %v1497_v52 = vpop.permute.xlu1 %1496 }
 0x26e   : > { %1415 = vrot.lane.b32.xlu1 %v1410_v44, %s2795_s18  ;;  %1431 = vrot.lane.b32.xlu0 %v1427_v42, %s2796_s27  ;;  %v1499_v53 = vmul.f32 %v1497_v52, %v3158_v55  ;;  %v1500_v54 = vmul.f32 %v1497_v52, %v3166_v14 }
 0x272   : > { %1433 = vrot.lane.b32.xlu1 %v1428_v47, %s2796_s27  ;;  %1449 = vrot.lane.b32.xlu0 %v1445_v45, %s2797_s30  ;;  %v1235_v0 = vpop.permute.xlu1 %1234 }
 0x273   : > { %v1238_v11 = vmul.f32 %v1235_v0, %v3163_v13  ;;  %v1237_v10 = vmul.f32 %v1235_v0, %v3158_v55 }
 0x276   : > { %1451 = vrot.lane.b32.xlu1 %v1446_v3, %s2797_s30  ;;  %1467 = vrot.lane.b32.xlu0 %v1463_v49, %s2798_s22 }
 0x27a   : > { %1469 = vrot.lane.b32.xlu1 %v1464_v51, %s2798_s22  ;;  %1485 = vrot.lane.b32.xlu0 %v1481_v50, %s2799_s1 }
 0x27e   : > { %1487 = vrot.lane.b32.xlu1 %v1482_v35, %s2799_s1  ;;  %1503 = vrot.lane.b32.xlu0 %v1499_v53, %s2800_s2 }
 0x282   : > { %1505 = vrot.lane.b32.xlu1 %v1500_v54, %s2800_s2 }
 0x2b7   : > { %v1252_v56 = vpop.permute.xlu0 %1251 }
 0x2bc   : > { %v1254_v57 = vpop.permute.xlu1 %1253  ;;  %v1270_v58 = vpop.permute.xlu0 %1269 }
 0x2bd   : > { %v1256_v12 = vsel %vm1255_vm4, %v1252_v56, %v1254_v57  ;;  %v1260_v16 = vadd.f32 %v1254_v57, %v1238_v11 }
 0x2be   : > { %v1259_v18 = vadd.f32 %v1256_v12, %v1237_v10 }
 0x2c0   : > { %v1272_v59 = vpop.permute.xlu1 %1271  ;;  %v1288_v60 = vpop.permute.xlu0 %1287 }
 0x2c1   : > { %v1274_v17 = vsel %vm1273_vm5, %v1270_v58, %v1272_v59  ;;  %v1278_v19 = vadd.f32 %v1272_v59, %v1260_v16 }
 0x2c2   : > { %v1277_v21 = vadd.f32 %v1274_v17, %v1259_v18 }
 0x2c4   : > { %v1290_v61 = vpop.permute.xlu1 %1289  ;;  %v1306_v62 = vpop.permute.xlu0 %1305 }
 0x2c5   : > { %v1292_v20 = vsel %vm1291_vm6, %v1288_v60, %v1290_v61  ;;  %v1296_v24 = vadd.f32 %v1290_v61, %v1278_v19 }
 0x2c6   : > { %v1295_v26 = vadd.f32 %v1292_v20, %v1277_v21 }
 0x2c8   : > { %v1308_v63 = vpop.permute.xlu1 %1307  ;;  %v1324_v2 = vpop.permute.xlu0 %1323 }
 0x2c9   : > { %v1310_v25 = vsel %vm1309_vm7, %v1306_v62, %v1308_v63  ;;  %v1314_v13 = vadd.f32 %v1308_v63, %v1296_v24 }
 0x2ca   : > { %v1313_v55 = vadd.f32 %v1310_v25, %v1295_v26 }
 0x2cc   : > { %v1326_v4 = vpop.permute.xlu1 %1325  ;;  %v1342_v5 = vpop.permute.xlu0 %1341 }
 0x2cd   : > { %v1328_v27 = vsel %vm1327_vm8, %v1324_v2, %v1326_v4  ;;  %v1332_v30 = vadd.f32 %v1326_v4, %v1314_v13 }
 0x2ce   : > { %v1331_v1 = vadd.f32 %v1328_v27, %v1313_v55 }
 0x2d0   : > { %v1344_v6 = vpop.permute.xlu1 %1343  ;;  %v1360_v7 = vpop.permute.xlu0 %1359 }
 0x2d1   : > { %v1346_v31 = vsel %vm1345_vm9, %v1342_v5, %v1344_v6  ;;  %v1350_v32 = vadd.f32 %v1344_v6, %v1332_v30 }
 0x2d2   : > { %v1349_v34 = vadd.f32 %v1346_v31, %v1331_v1 }
 0x2d4   : > { %v1362_v8 = vpop.permute.xlu1 %1361  ;;  %v1378_v9 = vpop.permute.xlu0 %1377 }
 0x2d5   : > { %v1364_v33 = vsel %vm1363_vm10, %v1360_v7, %v1362_v8  ;;  %v1368_v38 = vadd.f32 %v1362_v8, %v1350_v32 }
 0x2d6   : > { %v1367_v40 = vadd.f32 %v1364_v33, %v1349_v34 }
 0x2d8   : > { %v1380_v14 = vpop.permute.xlu1 %1379  ;;  %v1396_v15 = vpop.permute.xlu0 %1395 }
 0x2d9   : > { %v1382_v39 = vsel %vm1381_vm11, %v1378_v9, %v1380_v14  ;;  %v1386_v41 = vadd.f32 %v1380_v14, %v1368_v38 }
 0x2da   : > { %v1385_v43 = vadd.f32 %v1382_v39, %v1367_v40 }
 0x2dc   : > { %v1398_v22 = vpop.permute.xlu1 %1397  ;;  %v1414_v23 = vpop.permute.xlu0 %1413 }
 0x2dd   : > { %v1400_v42 = vsel %vm1399_vm12, %v1396_v15, %v1398_v22  ;;  %v1404_v47 = vadd.f32 %v1398_v22, %v1386_v41 }
 0x2de   : > { %v1403_v49 = vadd.f32 %v1400_v42, %v1385_v43 }
 0x2e0   : > { %v1416_v28 = vpop.permute.xlu1 %1415  ;;  %v1432_v29 = vpop.permute.xlu0 %1431 }
 0x2e1   : > { %v1418_v48 = vsel %vm1417_vm13, %v1414_v23, %v1416_v28  ;;  %v1422_v3 = vadd.f32 %v1416_v28, %v1404_v47 }
 0x2e2   : > { %v1421_v50 = vadd.f32 %v1418_v48, %v1403_v49 }
 0x2e4   : > { %v1434_v36 = vpop.permute.xlu1 %1433  ;;  %v1450_v37 = vpop.permute.xlu0 %1449 }
 0x2e5   : > { %v1436_v46 = vsel %vm1435_vm14, %v1432_v29, %v1434_v36  ;;  %v1440_v53 = vadd.f32 %v1434_v36, %v1422_v3 }
 0x2e6   : > { %v1439_v54 = vadd.f32 %v1436_v46, %v1421_v50 }
 0x2e8   : > { %v1452_v44 = vpop.permute.xlu1 %1451  ;;  %v1468_v45 = vpop.permute.xlu0 %1467 }
 0x2e9   : > { %v1454_v35 = vsel %vm1453_vm15, %v1450_v37, %v1452_v44  ;;  %v1458_v0 = vadd.f32 %v1452_v44, %v1440_v53 }
 0x2ea   : > { %v1457_v57 = vadd.f32 %v1454_v35, %v1439_v54 }
 0x2ec   : > { %v1470_v51 = vpop.permute.xlu1 %1469  ;;  %v1486_v52 = vpop.permute.xlu0 %1485 }
 0x2ed   : > { %v1472_v56 = vsel %vm1471_vm0, %v1468_v45, %v1470_v51  ;;  %v1476_v59 = vadd.f32 %v1470_v51, %v1458_v0 }
 0x2ee   : > { %v1475_v61 = vadd.f32 %v1472_v56, %v1457_v57 }
 0x2f0   : > { %v1488_v58 = vpop.permute.xlu1 %1487  ;;  %v1504_v62 = vpop.permute.xlu0 %1503 }
 0x2f1   : > { %v1490_v60 = vsel %vm1489_vm1, %v1486_v52, %v1488_v58  ;;  %v1494_v63 = vadd.f32 %v1488_v58, %v1476_v59 }
 0x2f2   : > { %v1493_v2 = vadd.f32 %v1490_v60, %v1475_v61 }
 0x2f4   : > { %v1506_v4 = vpop.permute.xlu1 %1505 }
 0x2f5   : > { %v1512_v5 = vadd.f32 %v1506_v4, %v1494_v63  ;;  %v1508_v6 = vsel %vm1507_vm2, %v1504_v62, %v1506_v4 }
 0x2f6   : > { %v1511_v7 = vadd.f32 %v1508_v6, %v1493_v2 }
 0x2f7   : > { %1515 = vst.msk [vmem:[%s2974_s26 + $0x8] sm:$0xff] %vm1514_vm3, %v1512_v5 }
 0x2f8   : > { %1513 = vst [vmem:[%s2974_s26] sm:$0xff] %v1511_v7 }
 0x2f9 PF: > { %s3448_s21 = sld [smem:[#allocation2_spill]] }
 0x2ff   : > { %p2376_p8 = scmp.ne.s32.totalorder %s3448_s21, 2 }
 0x300   : > { %v3203_v8 = vld [vmem:[%s2950_s17] sm:$0xff] (!%p2376_p8)  ;;  %s2801_s24 = smov (!%p2376_p8), 64   ;;  %v2802_v11 = vmov (!%p2376_p8), 1   ;;  %v3209_v12 = vld [vmem:[%s2950_s17 + $0x8] sm:$0xff] (!%p2376_p8)  ;;  %v2803_v10 = vmov (!%p2376_p8), 2   ;;  %v2804_v15 = vmov (!%p2376_p8), 3  }
 0x301   : > { %1519 = sbr.rel (%p2376_p8) target bundleno = 1153 (0x481), region = 64  ;;  %v1522_v9 = vld [vmem:[%s2955_s29] sm:$0xff] (!%p2376_p8)  ;;  %1537 = vrot.lane.b32.xlu0 (!%p2376_p8), %v3203_v8, %s2801_s24  ;;  %2624 = vset.pattern.permute.xlu1 (!%p2376_p8), %v2802_v11  ;;  %v1523_v14 = vld [vmem:[%s2955_s29 + $0x8] sm:$0xff] (!%p2376_p8)  ;;  %v2805_v16 = vmov (!%p2376_p8), 4   ;;  %v2806_v17 = vmov (!%p2376_p8), 5   ;;  %v2807_v18 = vmov (!%p2376_p8), 7  }
 0x302   : > { %1550 = vperm.xlu1 (!%p2376_p8), %2624, %v1522_v9   ;;  %2625 = vset.pattern.permute.xlu0 (!%p2376_p8), %v2803_v10  ;;  %v2808_v19 = vmov (!%p2376_p8), 6   ;;  %v2809_v20 = vmov (!%p2376_p8), 8   ;;  %vm1536_vm4 = vcmask (!%p2376_p8), 1048064   ;;  %v2810_v25 = vmov (!%p2376_p8), 0   ;;  %s2811_s17 = smov (!%p2376_p8), 127   ;;  %s2812_s29 = smov (!%p2376_p8), 126  }
 0x303   : > { %s2813_s26 = smov (!%p2376_p8), 120   ;;  %s2814_s4 = smov (!%p2376_p8), 119   ;;  %vm1709_vm5 = vcmask (!%p2376_p8), 523264  }
 0x304   : > { %s2815_s20 = smov (!%p2376_p8), 118   ;;  %s2816_s28 = smov (!%p2376_p8), 112  }
 0x305   : > { %1540 = vrot.lane.b32.xlu0 (!%p2376_p8), %v3209_v12, %s2801_s24  ;;  %s2817_s12 = smov (!%p2376_p8), 111   ;;  %s2818_s13 = smov (!%p2376_p8), 110  }
 0x306   : > { %1554 = vperm.xlu1 (!%p2376_p8), %2624, %v1523_v14  }
 0x309   : > { %1570 = vperm.xlu0 %2625, %v1522_v9  }
 0x30a   : > { %2626 = vset.pattern.permute.xlu1 %v2803_v10 }
 0x30b   : > { %1574 = vperm.xlu1 %2626, %v1523_v14  }
 0x30d   : > { %2628 = vset.pattern.permute.xlu0 %v2804_v15 }
 0x30e   : > { %1594 = vperm.xlu0 %2628, %v1523_v14  }
 0x30f   : > { %2627 = vset.pattern.permute.xlu1 %v2804_v15 }
 0x310   : > { %1590 = vperm.xlu1 %2627, %v1522_v9  }
 0x312   : > { %2629 = vset.pattern.permute.xlu0 %v2805_v16 }
 0x313   : > { %1610 = vperm.xlu0 %2629, %v1522_v9  }
 0x314   : > { %2630 = vset.pattern.permute.xlu1 %v2805_v16 }
 0x315   : > { %1614 = vperm.xlu1 %2630, %v1523_v14  }
 0x317   : > { %2632 = vset.pattern.permute.xlu0 %v2806_v17 }
 0x318   : > { %1634 = vperm.xlu0 %2632, %v1523_v14  }
 0x319   : > { %2631 = vset.pattern.permute.xlu1 %v2806_v17 }
 0x31a   : > { %1630 = vperm.xlu1 %2631, %v1522_v9  }
 0x31c   : > { %2634 = vset.pattern.permute.xlu0 %v2807_v18 }
 0x31d   : > { %1670 = vperm.xlu0 %2634, %v1522_v9  }
 0x31e   : > { %2633 = vset.pattern.permute.xlu1 %v2808_v19 }
 0x31f   : > { %1650 = vperm.xlu1 %2633, %v1522_v9  }
 0x321   : > { %2637 = vset.pattern.permute.xlu0 %v2809_v20 }
 0x322   : > { %1694 = vperm.xlu0 %2637, %v1523_v14  }
 0x323   : > { %1654 = vperm.xlu1 %2633, %v1523_v14  }
 0x327   : > { %2635 = vset.pattern.permute.xlu1 %v2807_v18 }
 0x373   : > { %v1538_v21 = vpop.permute.xlu0 %1537 }
 0x374   : > { %v1539_v22 = vsel %vm1536_vm4, %v1538_v21, %v3203_v8 }
 0x375   : > { %1543 = vrot.lane.b32.xlu1 %v1539_v22, %s2801_s24 }
 0x377   : > { %v1541_v23 = vpop.permute.xlu0 %1540 }
 0x378   : > { %v1542_v24 = vsel %vm1536_vm4, %v1541_v23, %v3209_v12 }
 0x379   : > { %1545 = vrot.lane.b32.xlu1 %v1542_v24, %s2801_s24 }
 0x37d   : > { %1674 = vperm.xlu1 %2635, %v1523_v14  }
 0x381   : > { %2636 = vset.pattern.permute.xlu1 %v2809_v20  ;;  %v1551_v26 = vpop.permute.xlu1 %1550 }
 0x382   : > { %1690 = vperm.xlu1 %2636, %v1522_v9  }
 0x385   : > { %v1555_v13 = vpop.permute.xlu1 %1554 }
 0x386   : > { %2638 = vset.pattern.permute.xlu1 %v2810_v25 }
 0x387   : > { %1526 = vperm.xlu1 %2638, %v1522_v9  }
 0x388   : > { %v1571_v1 = vpop.permute.xlu0 %1570 }
 0x38a   : > { %v1575_v27 = vpop.permute.xlu1 %1574 }
 0x38b   : > { %1531 = vperm.xlu1 %2638, %v1523_v14  }
 0x38d   : > { %v1595_v37 = vpop.permute.xlu0 %1594 }
 0x38f   : > { %v1591_v55 = vpop.permute.xlu1 %1590 }
 0x392   : > { %v1611_v43 = vpop.permute.xlu0 %1610 }
 0x394   : > { %v1615_v28 = vpop.permute.xlu1 %1614 }
 0x397   : > { %v1635_v47 = vpop.permute.xlu0 %1634 }
 0x399   : > { %v1631_v29 = vpop.permute.xlu1 %1630 }
 0x39c   : > { %v1671_v51 = vpop.permute.xlu0 %1670 }
 0x39e   : > { %v1651_v30 = vpop.permute.xlu1 %1650 }
 0x3a1   : > { %v1695_v56 = vpop.permute.xlu0 %1694 }
 0x3a2   : > { %v1655_v31 = vpop.permute.xlu1 %1654 }
 0x3e7   : > { %v1544_v32 = vpop.permute.xlu1 %1543 }
 0x3e8   : > { %v1547_v33 = vsel %vm1536_vm4, %v1544_v32, %v3203_v8 }
 0x3e9   : > { %v1557_v34 = vmul.f32 %v1551_v26, %v1547_v33  ;;  %v1577_v40 = vmul.f32 %v1571_v1, %v1547_v33  ;;  %v1597_v42 = vmul.f32 %v1591_v55, %v1547_v33  ;;  %v1617_v45 = vmul.f32 %v1611_v43, %v1547_v33 }
 0x3ea   : > { %v1637_v49 = vmul.f32 %v1631_v29, %v1547_v33  ;;  %v1657_v46 = vmul.f32 %v1651_v30, %v1547_v33  ;;  %v1677_v52 = vmul.f32 %v1671_v51, %v1547_v33 }
 0x3eb   : > { %1561 = vrot.lane.b32.xlu0 %v1557_v34, %s2811_s17  ;;  %v1546_v36 = vpop.permute.xlu1 %1545 }
 0x3ec   : > { %v1548_v38 = vsel %vm1536_vm4, %v1546_v36, %v3209_v12 }
 0x3ed   : > { %v1558_v39 = vmul.f32 %v1555_v13, %v1548_v38  ;;  %v1578_v41 = vmul.f32 %v1575_v27, %v1548_v38  ;;  %v1598_v44 = vmul.f32 %v1595_v37, %v1548_v38  ;;  %v1618_v48 = vmul.f32 %v1615_v28, %v1548_v38 }
 0x3ee   : > { %v1638_v50 = vmul.f32 %v1635_v47, %v1548_v38  ;;  %v1658_v53 = vmul.f32 %v1655_v31, %v1548_v38  ;;  %v1698_v57 = vmul.f32 %v1695_v56, %v1548_v38 }
 0x3ef   : > { %1563 = vrot.lane.b32.xlu1 %v1558_v39, %s2811_s17  ;;  %1581 = vrot.lane.b32.xlu0 %v1577_v40, %s2812_s29 }
 0x3f3   : > { %1583 = vrot.lane.b32.xlu1 %v1578_v41, %s2812_s29  ;;  %1601 = vrot.lane.b32.xlu0 %v1597_v42, %s2813_s26 }
 0x3f7   : > { %1603 = vrot.lane.b32.xlu1 %v1598_v44, %s2813_s26  ;;  %1621 = vrot.lane.b32.xlu0 %v1617_v45, %s2814_s4 }
 0x3fb   : > { %1623 = vrot.lane.b32.xlu1 %v1618_v48, %s2814_s4  ;;  %1641 = vrot.lane.b32.xlu0 %v1637_v49, %s2815_s20 }
 0x3fc   : > { %v1675_v3 = vpop.permute.xlu1 %1674 }
 0x3fd   : > { %v1678_v54 = vmul.f32 %v1675_v3, %v1548_v38 }
 0x3ff   : > { %1661 = vrot.lane.b32.xlu0 %v1657_v46, %s2816_s28  ;;  %1643 = vrot.lane.b32.xlu1 %v1638_v50, %s2815_s20 }
 0x401   : > { %v1691_v35 = vpop.permute.xlu1 %1690 }
 0x402   : > { %v1697_v0 = vmul.f32 %v1691_v35, %v1547_v33 }
 0x403   : > { %1663 = vrot.lane.b32.xlu1 %v1658_v53, %s2816_s28  ;;  %1681 = vrot.lane.b32.xlu0 %v1677_v52, %s2817_s12 }
 0x406   : > { %v1527_v58 = vpop.permute.xlu1 %1526 }
 0x407   : > { %1683 = vrot.lane.b32.xlu1 %v1678_v54, %s2817_s12  ;;  %1701 = vrot.lane.b32.xlu0 %v1697_v0, %s2818_s13  ;;  %v1534_v6 = vmul.f32 %v1527_v58, %v3203_v8 }
 0x40a   : > { %v1532_v59 = vpop.permute.xlu1 %1531 }
 0x40b   : > { %1703 = vrot.lane.b32.xlu1 %v1698_v57, %s2818_s13  ;;  %v1535_v10 = vmul.f32 %v1532_v59, %v3209_v12 }
 0x45d   : > { %v1562_v60 = vpop.permute.xlu0 %1561 }
 0x45e   : > { %v1567_v7 = vadd.f32 %v1562_v60, %v1534_v6 }
 0x461   : > { %v1564_v61 = vpop.permute.xlu1 %1563  ;;  %v1582_v62 = vpop.permute.xlu0 %1581 }
 0x462   : > { %v1587_v14 = vadd.f32 %v1582_v62, %v1567_v7  ;;  %v1568_v15 = vadd.f32 %v1564_v61, %v1535_v10 }
 0x465   : > { %v1584_v63 = vpop.permute.xlu1 %1583  ;;  %v1602_v2 = vpop.permute.xlu0 %1601 }
 0x466   : > { %v1607_v16 = vadd.f32 %v1602_v2, %v1587_v14  ;;  %v1588_v19 = vadd.f32 %v1584_v63, %v1568_v15 }
 0x469   : > { %v1604_v4 = vpop.permute.xlu1 %1603  ;;  %v1622_v5 = vpop.permute.xlu0 %1621 }
 0x46a   : > { %v1627_v20 = vadd.f32 %v1622_v5, %v1607_v16  ;;  %v1608_v21 = vadd.f32 %v1604_v4, %v1588_v19 }
 0x46d   : > { %v1624_v9 = vpop.permute.xlu1 %1623  ;;  %v1642_v11 = vpop.permute.xlu0 %1641 }
 0x46e   : > { %v1647_v22 = vadd.f32 %v1642_v11, %v1627_v20  ;;  %v1628_v25 = vadd.f32 %v1624_v9, %v1608_v21 }
 0x471   : > { %v1644_v17 = vpop.permute.xlu1 %1643  ;;  %v1662_v18 = vpop.permute.xlu0 %1661 }
 0x472   : > { %v1667_v8 = vadd.f32 %v1662_v18, %v1647_v22  ;;  %v1648_v26 = vadd.f32 %v1644_v17, %v1628_v25 }
 0x475   : > { %v1664_v23 = vpop.permute.xlu1 %1663  ;;  %v1682_v24 = vpop.permute.xlu0 %1681 }
 0x476   : > { %v1687_v13 = vadd.f32 %v1682_v24, %v1667_v8  ;;  %v1668_v55 = vadd.f32 %v1664_v23, %v1648_v26 }
 0x479   : > { %v1684_v27 = vpop.permute.xlu1 %1683  ;;  %v1702_v12 = vpop.permute.xlu0 %1701 }
 0x47a   : > { %v1707_v28 = vadd.f32 %v1702_v12, %v1687_v13  ;;  %v1688_v29 = vadd.f32 %v1684_v27, %v1668_v55 }
 0x47c   : > { %1710 = vst.msk [vmem:[%s2979_s0] sm:$0xff] %vm1709_vm5, %v1707_v28 }
 0x47d   : > { %v1704_v30 = vpop.permute.xlu1 %1703 }
 0x47e   : > { %v1708_v31 = vadd.f32 %v1704_v30, %v1688_v29 }
 0x480   : > { %1711 = vst.msk [vmem:[%s2979_s0 + $0x8] sm:$0xff] %vm1709_vm5, %v1708_v31 }
 0x481 PF: > { %s3449_s16 = sld [smem:[#allocation2_spill]] }
 0x487   : > { %p2377_p9 = scmp.ne.s32.totalorder %s3449_s16, 3 }
 0x488   : > { %v3230_v1 = vld [vmem:[%s2965_s23 + $0x10] sm:$0xff] (!%p2377_p9)  ;;  %v3233_v32 = vld [vmem:[%s2965_s23] sm:$0xff] (!%p2377_p9)  ;;  %v2819_v33 = vmov (!%p2377_p9), 0   ;;  %v3238_v34 = vld [vmem:[%s2965_s23 + $0x18] sm:$0xff] (!%p2377_p9)  ;;  %s2820_s0 = smov (!%p2377_p9), 36   ;;  %v2821_v41 = vmov (!%p2377_p9), 1  }
 0x489   : > { %1715 = sbr.rel (%p2377_p9) target bundleno = 1612 (0x64c), region = 68  ;;  %2640 = vset.pattern.permute.xlu1 (!%p2377_p9), %v2819_v33  ;;  %2639 = vset.pattern.permute.xlu0 (!%p2377_p9), %v2819_v33  ;;  %v3241_v36 = vld [vmem:[%s2965_s23 + $0x8] sm:$0xff] (!%p2377_p9)  ;;  %v3249_v38 = vld [vmem:[%s2960_s14] sm:$0xff] (!%p2377_p9)  ;;  %v3256_v39 = vld [vmem:[%s2960_s14 + $0x10] sm:$0xff] (!%p2377_p9)  ;;  %v2822_v42 = vmov (!%p2377_p9), 2   ;;  %v2823_v43 = vmov (!%p2377_p9), 3  }
 0x48a   : > { %1736 = vperm.xlu1 (!%p2377_p9), %2640, %v3230_v1   ;;  %1726 = vperm.xlu0 (!%p2377_p9), %2639, %v3233_v32   ;;  %v3246_v37 = vld [vmem:[%s2960_s14 + $0x8] sm:$0xff] (!%p2377_p9)  ;;  %v3259_v40 = vld [vmem:[%s2960_s14 + $0x18] sm:$0xff] (!%p2377_p9)  ;;  %v2824_v44 = vmov (!%p2377_p9), 4   ;;  %v2825_v45 = vmov (!%p2377_p9), 5   ;;  %v2826_v47 = vmov (!%p2377_p9), 6   ;;  %v2827_v48 = vmov (!%p2377_p9), 7  }
 0x48b   : > { %v2828_v49 = vmov (!%p2377_p9), 8   ;;  %vm1748_vm6 = vcmask (!%p2377_p9), 1047840   ;;  %s2829_s14 = smov (!%p2377_p9), 127   ;;  %s2830_s23 = smov (!%p2377_p9), 126   ;;  %vm2093_vm7 = vcmask (!%p2377_p9), 293888  }
 0x48c   : > { %s2831_s25 = smov (!%p2377_p9), 122   ;;  %s2832_s19 = smov (!%p2377_p9), 121  }
 0x48d   : > { %s2833_s18 = smov (!%p2377_p9), 120   ;;  %s2834_s27 = smov (!%p2377_p9), 116  }
 0x48e   : > { %1741 = vperm.xlu1 (!%p2377_p9), %2640, %v3238_v34   ;;  %1731 = vperm.xlu0 (!%p2377_p9), %2639, %v3241_v36   ;;  %s2835_s30 = smov (!%p2377_p9), 115   ;;  %s2836_s22 = smov (!%p2377_p9), 114  }
 0x492   : > { %1752 = vrot.lane.b32.xlu1 %v3246_v37, %s2820_s0  ;;  %1749 = vrot.lane.b32.xlu0 %v3249_v38, %s2820_s0 }
 0x493   : > { %2642 = vset.pattern.permute.xlu1 %v2821_v41  ;;  %2641 = vset.pattern.permute.xlu0 %v2821_v41 }
 0x496   : > { %1755 = vrot.lane.b32.xlu0 %v3256_v39, %s2820_s0  ;;  %1758 = vrot.lane.b32.xlu1 %v3259_v40, %s2820_s0 }
 0x49a   : > { %1778 = vperm.xlu1 %2642, %v3241_v36   ;;  %1774 = vperm.xlu0 %2641, %v3233_v32  }
 0x49e   : > { %1782 = vperm.xlu1 %2642, %v3230_v1   ;;  %1786 = vperm.xlu0 %2641, %v3238_v34  }
 0x4a2   : > { %2643 = vset.pattern.permute.xlu1 %v2822_v42  ;;  %2644 = vset.pattern.permute.xlu0 %v2822_v42 }
 0x4a3   : > { %1814 = vperm.xlu1 %2643, %v3233_v32   ;;  %1818 = vperm.xlu0 %2644, %v3241_v36  }
 0x4a7   : > { %1822 = vperm.xlu1 %2643, %v3230_v1   ;;  %2645 = vset.pattern.permute.xlu0 %v2823_v43 }
 0x4a8   : > { %1854 = vperm.xlu0 %2645, %v3233_v32  }
 0x4ab   : > { %1826 = vperm.xlu1 %2643, %v3238_v34  }
 0x4ac   : > { %1866 = vperm.xlu0 %2645, %v3238_v34  }
 0x4af   : > { %2646 = vset.pattern.permute.xlu1 %v2823_v43 }
 0x4b0   : > { %1858 = vperm.xlu1 %2646, %v3241_v36   ;;  %2648 = vset.pattern.permute.xlu0 %v2824_v44 }
 0x4b1   : > { %1898 = vperm.xlu0 %2648, %v3241_v36  }
 0x4b4   : > { %1862 = vperm.xlu1 %2646, %v3230_v1  }
 0x4b5   : > { %2649 = vset.pattern.permute.xlu0 %v2825_v45 }
 0x4b6   : > { %1934 = vperm.xlu0 %2649, %v3233_v32  }
 0x4b8   : > { %2647 = vset.pattern.permute.xlu1 %v2824_v44 }
 0x4b9   : > { %1894 = vperm.xlu1 %2647, %v3233_v32  }
 0x4ba   : > { %1946 = vperm.xlu0 %2649, %v3238_v34  }
 0x4bd   : > { %1902 = vperm.xlu1 %2647, %v3230_v1  }
 0x4be   : > { %2652 = vset.pattern.permute.xlu0 %v2826_v47 }
 0x4bf   : > { %1978 = vperm.xlu0 %2652, %v3241_v36  }
 0x4c1   : > { %1906 = vperm.xlu1 %2647, %v3238_v34  }
 0x4c3   : > { %2653 = vset.pattern.permute.xlu0 %v2827_v48 }
 0x4c4   : > { %2014 = vperm.xlu0 %2653, %v3233_v32  }
 0x4c5   : > { %2650 = vset.pattern.permute.xlu1 %v2825_v45 }
 0x4c6   : > { %1938 = vperm.xlu1 %2650, %v3241_v36  }
 0x4ca   : > { %1942 = vperm.xlu1 %2650, %v3230_v1  }
 0x4ce   : > { %2651 = vset.pattern.permute.xlu1 %v2826_v47 }
 0x4cf   : > { %1974 = vperm.xlu1 %2651, %v3233_v32  }
 0x4d3   : > { %1982 = vperm.xlu1 %2651, %v3230_v1  }
 0x4d7   : > { %1986 = vperm.xlu1 %2651, %v3238_v34  }
 0x4db   : > { %2654 = vset.pattern.permute.xlu1 %v2827_v48 }
 0x4dc   : > { %2018 = vperm.xlu1 %2654, %v3241_v36  }
 0x4e0   : > { %2022 = vperm.xlu1 %2654, %v3230_v1  }
 0x4e4   : > { %2655 = vset.pattern.permute.xlu1 %v2828_v49 }
 0x509   : > { %v3292_v3 = vpop.permute.xlu1 %1736  ;;  %v3294_v46 = vpop.permute.xlu0 %1726 }
 0x50d   : > { %v3296_v50 = vpop.permute.xlu1 %1741  ;;  %v3298_v51 = vpop.permute.xlu0 %1731 }
 0x511   : > { %v1753_v52 = vpop.permute.xlu1 %1752  ;;  %v1750_v53 = vpop.permute.xlu0 %1749 }
 0x512   : > { %v1754_v35 = vsel %vm1748_vm6, %v1753_v52, %v3246_v37  ;;  %v1751_v54 = vsel %vm1748_vm6, %v1750_v53, %v3249_v38 }
 0x513   : > { %1763 = vrot.lane.b32.xlu1 %v1754_v35, %s2820_s0  ;;  %1761 = vrot.lane.b32.xlu0 %v1751_v54, %s2820_s0 }
 0x515   : > { %v1756_v0 = vpop.permute.xlu0 %1755  ;;  %v1759_v56 = vpop.permute.xlu1 %1758 }
 0x516   : > { %v1757_v57 = vsel %vm1748_vm6, %v1756_v0, %v3256_v39  ;;  %v1760_v58 = vsel %vm1748_vm6, %v1759_v56, %v3259_v40 }
 0x517   : > { %2054 = vperm.xlu1 %2655, %v3233_v32   ;;  %1765 = vrot.lane.b32.xlu0 %v1757_v57, %s2820_s0 }
 0x519   : > { %v1779_v59 = vpop.permute.xlu1 %1778  ;;  %v1775_v6 = vpop.permute.xlu0 %1774 }
 0x51b   : > { %1767 = vrot.lane.b32.xlu1 %v1760_v58, %s2820_s0  ;;  %2026 = vperm.xlu0 %2653, %v3238_v34  }
 0x51d   : > { %v1783_v60 = vpop.permute.xlu1 %1782  ;;  %v1787_v9 = vpop.permute.xlu0 %1786 }
 0x51f   : > { %2062 = vperm.xlu1 %2655, %v3230_v1   ;;  %2656 = vset.pattern.permute.xlu0 %v2828_v49 }
 0x520   : > { %2058 = vperm.xlu0 %2656, %v3241_v36  }
 0x522   : > { %v1815_v61 = vpop.permute.xlu1 %1814  ;;  %v1819_v10 = vpop.permute.xlu0 %1818 }
 0x523   : > { %2066 = vperm.xlu1 %2655, %v3238_v34  }
 0x526   : > { %v1823_v62 = vpop.permute.xlu1 %1822 }
 0x527   : > { %v1855_v15 = vpop.permute.xlu0 %1854 }
 0x52a   : > { %v1827_v63 = vpop.permute.xlu1 %1826 }
 0x52b   : > { %v1867_v17 = vpop.permute.xlu0 %1866 }
 0x52f   : > { %v1859_v2 = vpop.permute.xlu1 %1858 }
 0x530   : > { %v1899_v19 = vpop.permute.xlu0 %1898 }
 0x533   : > { %v1863_v4 = vpop.permute.xlu1 %1862 }
 0x535   : > { %v1935_v21 = vpop.permute.xlu0 %1934 }
 0x538   : > { %v3317_v5 = vpop.permute.xlu1 %1894 }
 0x539   : > { %v1947_v23 = vpop.permute.xlu0 %1946 }
 0x53c   : > { %v3319_v7 = vpop.permute.xlu1 %1902 }
 0x53e   : > { %v1979_v25 = vpop.permute.xlu0 %1978 }
 0x540   : > { %v1907_v11 = vpop.permute.xlu1 %1906 }
 0x543   : > { %v2015_v26 = vpop.permute.xlu0 %2014 }
 0x545   : > { %v1939_v14 = vpop.permute.xlu1 %1938 }
 0x549   : > { %v3321_v16 = vpop.permute.xlu1 %1942 }
 0x54e   : > { %v3323_v18 = vpop.permute.xlu1 %1974 }
 0x552   : > { %v3325_v20 = vpop.permute.xlu1 %1982 }
 0x556   : > { %v3327_v22 = vpop.permute.xlu1 %1986 }
 0x55b   : > { %v3329_v24 = vpop.permute.xlu1 %2018 }
 0x55f   : > { %v2023_v8 = vpop.permute.xlu1 %2022 }
 0x585   : > { %v1764_v13 = vpop.permute.xlu1 %1763  ;;  %v1762_v27 = vpop.permute.xlu0 %1761 }
 0x586   : > { %v3333_v12 = vsel %vm1748_vm6, %v1764_v13, %v3246_v37  ;;  %v3337_v55 = vsel %vm1748_vm6, %v1762_v27, %v3249_v38 }
 0x587   : > { %v1790_v28 = vmul.f32 %v1779_v59, %v3333_v12  ;;  %v1789_v29 = vmul.f32 %v1775_v6, %v3337_v55  ;;  %v3346_v1 = vmul.f32 %v2015_v26, %v3337_v55  ;;  %v1830_v34 = vmul.f32 %v1819_v10, %v3333_v12 }
 0x588   : > { %v1829_v45 = vmul.f32 %v1815_v61, %v3337_v55  ;;  %v1870_v47 = vmul.f32 %v1859_v2, %v3333_v12  ;;  %v1869_v52 = vmul.f32 %v1855_v15, %v3337_v55  ;;  %v1910_v53 = vmul.f32 %v1899_v19, %v3333_v12 }
 0x589   : > { %1799 = vrot.lane.b32.xlu0 %v1790_v28, %s2829_s14  ;;  %1797 = vrot.lane.b32.xlu1 %v1789_v29, %s2829_s14  ;;  %v1766_v30 = vpop.permute.xlu0 %1765  ;;  %v1909_v0 = vmul.f32 %v3317_v5, %v3337_v55  ;;  %v1950_v56 = vmul.f32 %v1939_v14, %v3333_v12  ;;  %v1949_v59 = vmul.f32 %v1935_v21, %v3337_v55 }
 0x58a   : > { %v3343_v31 = vsel %vm1748_vm6, %v1766_v30, %v3256_v39  ;;  %v1989_v2 = vmul.f32 %v3323_v18, %v3337_v55 }
 0x58b   : > { %v1791_v32 = vmul.f32 %v1783_v60, %v3343_v31  ;;  %v3350_v33 = vmul.f32 %v2023_v8, %v3343_v31  ;;  %v1831_v48 = vmul.f32 %v1823_v62, %v3343_v31  ;;  %v1871_v35 = vmul.f32 %v1863_v4, %v3343_v31 }
 0x58c   : > { %v1911_v57 = vmul.f32 %v3319_v7, %v3343_v31  ;;  %v1990_v60 = vmul.f32 %v1979_v25, %v3333_v12  ;;  %v1951_v61 = vmul.f32 %v3321_v16, %v3343_v31  ;;  %v2030_v4 = vmul.f32 %v3329_v24, %v3333_v12 }
 0x58d   : > { %1801 = vrot.lane.b32.xlu1 %v1791_v32, %s2829_s14  ;;  %v1991_v7 = vmul.f32 %v3325_v20, %v3343_v31  ;;  %v1745_v32 = vmul.f32 %v3298_v51, %v3246_v37 }
 0x591   : > { %1839 = vrot.lane.b32.xlu1 %v1830_v34, %s2830_s23 }
 0x596   : > { %v3353_v36 = vpop.permute.xlu1 %2054 }
 0x597   : > { %v2069_v15 = vmul.f32 %v3353_v36, %v3337_v55 }
 0x59a   : > { %v1768_v41 = vpop.permute.xlu1 %1767 }
 0x59b   : > { %v1772_v42 = vsel %vm1748_vm6, %v1768_v41, %v3259_v40 }
 0x59c   : > { %v1792_v43 = vmul.f32 %v1787_v9, %v1772_v42  ;;  %v1832_v44 = vmul.f32 %v1827_v63, %v1772_v42  ;;  %v1872_v49 = vmul.f32 %v1867_v17, %v1772_v42  ;;  %v1912_v54 = vmul.f32 %v1907_v11, %v1772_v42  ;;  %v2027_v63 = vpop.permute.xlu0 %2026 }
 0x59d   : > { %v1952_v58 = vmul.f32 %v1947_v23, %v1772_v42  ;;  %v1992_v62 = vmul.f32 %v3327_v22, %v1772_v42  ;;  %v2032_v6 = vmul.f32 %v2027_v63, %v1772_v42 }
 0x59e   : > { %1803 = vrot.lane.b32.xlu0 %v1792_v43, %s2829_s14  ;;  %1843 = vrot.lane.b32.xlu1 %v1832_v44, %s2830_s23  ;;  %v2063_v5 = vpop.permute.xlu1 %2062 }
 0x59f   : > { %v2071_v16 = vmul.f32 %v2063_v5, %v3343_v31 }
 0x5a0   : > { %v2059_v9 = vpop.permute.xlu0 %2058 }
 0x5a1   : > { %v2070_v11 = vmul.f32 %v2059_v9, %v3333_v12 }
 0x5a2   : > { %1837 = vrot.lane.b32.xlu0 %v1829_v45, %s2830_s23  ;;  %1879 = vrot.lane.b32.xlu1 %v1870_v47, %s2831_s25  ;;  %v2067_v10 = vpop.permute.xlu1 %2066 }
 0x5a3   : > { %v2072_v14 = vmul.f32 %v2067_v10, %v1772_v42 }
 0x5a6   : > { %1841 = vrot.lane.b32.xlu0 %v1831_v48, %s2830_s23  ;;  %1883 = vrot.lane.b32.xlu1 %v1872_v49, %s2831_s25  ;;  %v1744_v48 = vmul.f32 %v3294_v46, %v3249_v38 }
 0x5aa   : > { %1877 = vrot.lane.b32.xlu0 %v1869_v52, %s2831_s25  ;;  %1919 = vrot.lane.b32.xlu1 %v1910_v53, %s2832_s19 }
 0x5ae   : > { %1881 = vrot.lane.b32.xlu0 %v1871_v35, %s2831_s25  ;;  %1923 = vrot.lane.b32.xlu1 %v1912_v54, %s2832_s19 }
 0x5b2   : > { %1917 = vrot.lane.b32.xlu0 %v1909_v0, %s2832_s19  ;;  %1959 = vrot.lane.b32.xlu1 %v1950_v56, %s2833_s18 }
 0x5b6   : > { %1921 = vrot.lane.b32.xlu0 %v1911_v57, %s2832_s19  ;;  %1963 = vrot.lane.b32.xlu1 %v1952_v58, %s2833_s18 }
 0x5ba   : > { %1957 = vrot.lane.b32.xlu0 %v1949_v59, %s2833_s18  ;;  %1999 = vrot.lane.b32.xlu1 %v1990_v60, %s2834_s27 }
 0x5be   : > { %1961 = vrot.lane.b32.xlu0 %v1951_v61, %s2833_s18  ;;  %2003 = vrot.lane.b32.xlu1 %v1992_v62, %s2834_s27 }
 0x5c2   : > { %1997 = vrot.lane.b32.xlu0 %v1989_v2, %s2834_s27  ;;  %2039 = vrot.lane.b32.xlu1 %v2030_v4, %s2835_s30 }
 0x5c6   : > { %2001 = vrot.lane.b32.xlu0 %v1991_v7, %s2834_s27  ;;  %2043 = vrot.lane.b32.xlu1 %v2032_v6, %s2835_s30 }
 0x5ca   : > { %2037 = vrot.lane.b32.xlu0 %v3346_v1, %s2835_s30  ;;  %2079 = vrot.lane.b32.xlu1 %v2070_v11, %s2836_s22 }
 0x5ce   : > { %2041 = vrot.lane.b32.xlu0 %v3350_v33, %s2835_s30  ;;  %2083 = vrot.lane.b32.xlu1 %v2072_v14, %s2836_s22  ;;  %v1747_v33 = vmul.f32 %v3296_v50, %v3259_v40  ;;  %v1746_v40 = vmul.f32 %v3292_v3, %v3256_v39 }
 0x5d2   : > { %2077 = vrot.lane.b32.xlu0 %v2069_v15, %s2836_s22 }
 0x5d6   : > { %2081 = vrot.lane.b32.xlu0 %v2071_v16, %s2836_s22 }
 0x5fb   : > { %v1798_v17 = vpop.permute.xlu1 %1797  ;;  %v1800_v19 = vpop.permute.xlu0 %1799 }
 0x5fc   : > { %v1810_v34 = vadd.f32 %v1800_v19, %v1745_v32  ;;  %v1809_v53 = vadd.f32 %v1798_v17, %v1744_v48 }
 0x5ff   : > { %v1802_v18 = vpop.permute.xlu1 %1801 }
 0x600   : > { %v1811_v57 = vadd.f32 %v1802_v18, %v1746_v40 }
 0x603   : > { %v1840_v20 = vpop.permute.xlu1 %1839 }
 0x604   : > { %v1850_v42 = vadd.f32 %v1840_v20, %v1810_v34 }
 0x610   : > { %v1844_v21 = vpop.permute.xlu1 %1843  ;;  %v1804_v22 = vpop.permute.xlu0 %1803 }
 0x611   : > { %v1812_v43 = vadd.f32 %v1804_v22, %v1747_v33 }
 0x613   : > { %v1852_v49 = vadd.f32 %v1844_v21, %v1812_v43 }
 0x614   : > { %v1880_v23 = vpop.permute.xlu1 %1879  ;;  %v1838_v24 = vpop.permute.xlu0 %1837 }
 0x615   : > { %v1890_v44 = vadd.f32 %v1880_v23, %v1850_v42  ;;  %v1849_v50 = vadd.f32 %v1838_v24, %v1809_v53 }
 0x618   : > { %v1884_v25 = vpop.permute.xlu1 %1883  ;;  %v1842_v8 = vpop.permute.xlu0 %1841 }
 0x619   : > { %v1892_v35 = vadd.f32 %v1884_v25, %v1852_v49  ;;  %v1851_v61 = vadd.f32 %v1842_v8, %v1811_v57 }
 0x61c   : > { %v1920_v26 = vpop.permute.xlu1 %1919  ;;  %v1878_v13 = vpop.permute.xlu0 %1877 }
 0x61d   : > { %v1930_v52 = vadd.f32 %v1920_v26, %v1890_v44  ;;  %v1889_v58 = vadd.f32 %v1878_v13, %v1849_v50 }
 0x620   : > { %v1924_v27 = vpop.permute.xlu1 %1923  ;;  %v1882_v12 = vpop.permute.xlu0 %1881 }
 0x621   : > { %v1932_v0 = vadd.f32 %v1924_v27, %v1892_v35  ;;  %v1891_v4 = vadd.f32 %v1882_v12, %v1851_v61 }
 0x624   : > { %v1960_v28 = vpop.permute.xlu1 %1959  ;;  %v1918_v55 = vpop.permute.xlu0 %1917 }
 0x625   : > { %v1970_v54 = vadd.f32 %v1960_v28, %v1930_v52  ;;  %v1929_v62 = vadd.f32 %v1918_v55, %v1889_v58 }
 0x628   : > { %v1964_v29 = vpop.permute.xlu1 %1963  ;;  %v1922_v30 = vpop.permute.xlu0 %1921 }
 0x629   : > { %v1972_v59 = vadd.f32 %v1964_v29, %v1932_v0  ;;  %v1931_v7 = vadd.f32 %v1922_v30, %v1891_v4 }
 0x62c   : > { %v2000_v31 = vpop.permute.xlu1 %1999  ;;  %v1958_v1 = vpop.permute.xlu0 %1957 }
 0x62d   : > { %v2010_v56 = vadd.f32 %v2000_v31, %v1970_v54  ;;  %v1969_v5 = vadd.f32 %v1958_v1, %v1929_v62 }
 0x630   : > { %v2004_v36 = vpop.permute.xlu1 %2003  ;;  %v1962_v41 = vpop.permute.xlu0 %1961 }
 0x631   : > { %v2012_v63 = vadd.f32 %v2004_v36, %v1972_v59  ;;  %v1971_v10 = vadd.f32 %v1962_v41, %v1931_v7 }
 0x634   : > { %v2040_v45 = vpop.permute.xlu1 %2039  ;;  %v1998_v47 = vpop.permute.xlu0 %1997 }
 0x635   : > { %v2050_v60 = vadd.f32 %v2040_v45, %v2010_v56  ;;  %v2009_v9 = vadd.f32 %v1998_v47, %v1969_v5 }
 0x638   : > { %v2044_v37 = vpop.permute.xlu1 %2043  ;;  %v2002_v51 = vpop.permute.xlu0 %2001 }
 0x639   : > { %v2052_v39 = vadd.f32 %v2044_v37, %v2012_v63  ;;  %v2011_v16 = vadd.f32 %v2002_v51, %v1971_v10 }
 0x63c   : > { %v2080_v38 = vpop.permute.xlu1 %2079  ;;  %v2038_v46 = vpop.permute.xlu0 %2037 }
 0x63d   : > { %v2090_v2 = vadd.f32 %v2080_v38, %v2050_v60  ;;  %v2049_v14 = vadd.f32 %v2038_v46, %v2009_v9 }
 0x63f   : > { %2095 = vst.msk [vmem:[%s2984_s15 + $0x8] sm:$0xff] %vm2093_vm7, %v2090_v2 }
 0x640   : > { %v2084_v3 = vpop.permute.xlu1 %2083  ;;  %v2042_v6 = vpop.permute.xlu0 %2041 }
 0x641   : > { %v2092_v11 = vadd.f32 %v2084_v3, %v2052_v39  ;;  %v2051_v18 = vadd.f32 %v2042_v6, %v2011_v16 }
 0x643   : > { %2097 = vst.msk [vmem:[%s2984_s15 + $0x18] sm:$0xff] %vm2093_vm7, %v2092_v11 }
 0x644   : > { %v2078_v15 = vpop.permute.xlu0 %2077 }
 0x645   : > { %v2089_v17 = vadd.f32 %v2078_v15, %v2049_v14 }
 0x647   : > { %2094 = vst.msk [vmem:[%s2984_s15] sm:$0xff] %vm2093_vm7, %v2089_v17 }
 0x648   : > { %v2082_v19 = vpop.permute.xlu0 %2081 }
 0x649   : > { %v2091_v20 = vadd.f32 %v2082_v19, %v2051_v18 }
 0x64b   : > { %2096 = vst.msk [vmem:[%s2984_s15 + $0x10] sm:$0xff] %vm2093_vm7, %v2091_v20 }
 0x64c PF: > { %s3450_s1 = sld [smem:[#allocation5_spill]]  ;;  %s3451_s17 = sld [smem:[#allocation3_spill]] }
 0x64d   : > { %s3452_s18 = sld [smem:[#allocation4_spill]]  ;;  %s3453_s19 = sld [smem:[#allocation6_spill]] }
 0x64e   : > { %s3454_s20 = sld [smem:[#allocation7_spill]] }
 0x652   : > { %s22_s21 = sadd.s32 1, %s3450_s1  }
 0x653   : > { %p19_p10 = scmp.ge.s32.totalorder %s22_s21, 10  }
 0x655   :  { %21 = sbr.rel (!%p19_p10) target bundleno = 5 (0x5), region = 155 }

</bundles_post_ra>
